<compile_context>
chip_gen: v5e
topology: v5e:2x2
jax: 0.10.0
libtpu: 0.0.40
codegen_flags: <defaults>
</compile_context>

<pallas_src>
import functools

import jax
import jax.numpy as jnp
from jax.experimental import pallas as pl
from jax.experimental.pallas import tpu as pltpu

SELU_ALPHA = 1.6732632423543772
SELU_SCALE = 1.0507009873554805
BN_EPS = 1e-5

_MXU_DTYPE = jnp.float32            # flip to jnp.bfloat16 for large-C configs
_VMEM_LIMIT = 32 * 1024 * 1024      # explicit scoped-VMEM budget (v5e/v6e/v7x safe)


# -----------------------------------------------------------------------------
# kernels
# -----------------------------------------------------------------------------
def _conv3x3_kernel(xwin_ref, w_ref, raw_ref, sum_ref, ssq_ref):
    """3x3 conv on one row-tile + per-tile BN partial statistics.

    xwin_ref : (1, TR+2, W+2, C)  zero-padded input rows incl. 1-row halo
    w_ref    : (9*C, C)           tap-major (dy, dx, c_in) x c_out weights (resident)
    raw_ref  : (TR*W, C)          raw conv output tile (pre-BN)
    sum_ref  : (1, 1, C)          per-tile per-channel sum of raw
    ssq_ref  : (1, 1, C)          per-tile per-channel sum of raw^2
    """
    _, trp2, wp2, c = xwin_ref.shape
    tr, w = trp2 - 2, wp2 - 2

    xwin = xwin_ref[0]                                    # (TR+2, W+2, C)

    # Nine shifted views via static in-VMEM slices; fold taps into the K dim so
    # the whole tile is a single K = 9*C matmul on the MXU.
    cols = [
        xwin[dy:dy + tr, dx:dx + w, :].reshape(tr * w, c)
        for dy in range(3)
        for dx in range(3)
    ]
    patches = jnp.concatenate(cols, axis=1)               # (TR*W, 9*C)

    acc = jnp.dot(
        patches.astype(_MXU_DTYPE),
        w_ref[...].astype(_MXU_DTYPE),
        preferred_element_type=jnp.float32,
    )                                                     # (TR*W, C) f32
    # NOTE: conv bias intentionally omitted - training-mode BN subtracts the batch
    # mean, which cancels a per-channel constant shift exactly.

    raw_ref[...] = acc
    sum_ref[...] = jnp.sum(acc, axis=0, keepdims=True)[None]
    ssq_ref[...] = jnp.sum(acc * acc, axis=0, keepdims=True)[None]


def _selu(y):
    return SELU_SCALE * jnp.where(
        y > 0.0, y, SELU_ALPHA * (jnp.exp(jnp.minimum(y, 0.0)) - 1.0))


def _bn_act_kernel(x_ref, scale_ref, shift_ref, o_ref):
    """y = SELU(x * scale + shift)        (lane-dense elementwise pass)."""
    o_ref[...] = _selu(x_ref[...] * scale_ref[...] + shift_ref[...])


def _bn_res_act_kernel(x_ref, res_ref, scale_ref, shift_ref, o_ref):
    """y = SELU(x * scale + shift + res)  (lane-dense elementwise pass)."""
    o_ref[...] = _selu(x_ref[...] * scale_ref[...] + shift_ref[...] + res_ref[...])


# -----------------------------------------------------------------------------
# tiling helpers (static Python, evaluated at trace time)
# -----------------------------------------------------------------------------
def _largest_divisor(n, cap, multiple):
    for d in range(min(cap, n), 0, -1):
        if n % d == 0 and d % multiple == 0:
            return d
    return n  # fall back to the full extent (always a legal block)


def _pick_block_rows(H, W):
    """Largest row-tile height dividing H with TR*W a multiple of 8 and <= 2048 px."""
    best = None
    for r in range(1, H + 1):
        if H % r == 0 and (r * W) % 8 == 0 and r * W <= 2048:
            best = r
    return best if best is not None else H


def _halo_row_tiles(x_nhwc, tr):
    """(N, H, W, C) -> (N*T, TR+2, W+2, C): zero-padded row tiles with 1-row halo.

    Only the two halo rows per tile are duplicated (~(TR+2)/TR read amplification),
    replacing the previous 9x im2col materialization.
    """
    N, H, W, C = x_nhwc.shape
    T = H // tr
    xp = jnp.pad(x_nhwc, ((0, 0), (1, 1), (1, 1), (0, 0)))
    row_idx = jnp.arange(T)[:, None] * tr + jnp.arange(tr + 2)[None, :]   # (T, TR+2)
    tiles = xp[:, row_idx]                                # (N, T, TR+2, W+2, C)
    return tiles.reshape(N * T, tr + 2, W + 2, C)


# -----------------------------------------------------------------------------
# pallas_call wrappers
# -----------------------------------------------------------------------------
def _conv3x3(x_nhwc, w9, tr):
    """Tiled 3x3 conv (no bias).  Returns raw (M, C), sums (G, C), ssqs (G, C)."""
    N, H, W, C = x_nhwc.shape
    T = H // tr
    G = N * T
    TM = tr * W

    tiles = _halo_row_tiles(x_nhwc, tr)
    wmat = w9.reshape(9 * C, C)                           # tap-major (dy, dx, cin) x cout

    raw, sums, ssqs = pl.pallas_call(
        _conv3x3_kernel,
        grid=(G,),
        in_specs=[
            pl.BlockSpec((1, tr + 2, W + 2, C), lambda g: (g, 0, 0, 0)),
            pl.BlockSpec((9 * C, C), lambda g: (0, 0)),   # weights stay resident
        ],
        out_specs=(
            pl.BlockSpec((TM, C), lambda g: (g, 0)),
            pl.BlockSpec((1, 1, C), lambda g: (g, 0, 0)),
            pl.BlockSpec((1, 1, C), lambda g: (g, 0, 0)),
        ),
        out_shape=(
            jax.ShapeDtypeStruct((G * TM, C), jnp.float32),
            jax.ShapeDtypeStruct((G, 1, C), jnp.float32),
            jax.ShapeDtypeStruct((G, 1, C), jnp.float32),
        ),
        compiler_params=pltpu.CompilerParams(
            dimension_semantics=("parallel",),
            vmem_limit_bytes=_VMEM_LIMIT,
        ),
    )(tiles, wmat)
    return raw, sums.reshape(G, C), ssqs.reshape(G, C)


def _bn_apply(raw, sums, ssqs, gamma, beta, residual, M, C):
    """Finish batch-norm from partial stats, then apply scale/shift (+res) + SELU."""
    mean = jnp.sum(sums, axis=0) / M
    var = jnp.maximum(jnp.sum(ssqs, axis=0) / M - mean * mean, 0.0)
    inv_std = jax.lax.rsqrt(var + BN_EPS)
    scale = gamma.reshape(-1) * inv_std
    shift = beta.reshape(-1) - mean * scale

    # Lane-dense view: (M, C) and (M/fold, C*fold) share the same memory; with
    # C = 32 this turns 32-lane elementwise traffic into full 128-lane traffic.
    fold = 128 // C if (128 % C == 0 and M % max(128 // C, 1) == 0) else 1
    Ms, Cf = M // fold, C * fold
    x = raw.reshape(Ms, Cf)
    scale_t = jnp.tile(scale, fold).reshape(1, Cf)
    shift_t = jnp.tile(shift, fold).reshape(1, Cf)

    tb = _largest_divisor(Ms, cap=1024, multiple=8)
    grid = (Ms // tb,)
    blk = pl.BlockSpec((tb, Cf), lambda i: (i, 0))
    par = pl.BlockSpec((1, Cf), lambda i: (0, 0))         # resident per-channel params
    cparams = pltpu.CompilerParams(
        dimension_semantics=("parallel",), vmem_limit_bytes=_VMEM_LIMIT)
    out_shape = jax.ShapeDtypeStruct((Ms, Cf), jnp.float32)

    if residual is None:
        out = pl.pallas_call(
            _bn_act_kernel, grid=grid, in_specs=[blk, par, par],
            out_specs=blk, out_shape=out_shape, compiler_params=cparams,
        )(x, scale_t, shift_t)
    else:
        out = pl.pallas_call(
            _bn_res_act_kernel, grid=grid, in_specs=[blk, blk, par, par],
            out_specs=blk, out_shape=out_shape, compiler_params=cparams,
        )(x, residual.reshape(Ms, Cf), scale_t, shift_t)
    return out.reshape(M, C)


@functools.partial(jax.jit, static_argnames=("block_rows",))
def residual_block(x_nchw, params, block_rows=None):
    """Pallas implementation of Module.forward (training-mode BN).  NCHW in/out."""
    N, C, H, W = x_nchw.shape
    M = N * H * W

    tr = block_rows if block_rows is not None else _pick_block_rows(H, W)
    if H % tr != 0:
        tr = H
    assert (tr * W) % 8 == 0, "row-tile size (TR*W) must be a multiple of 8"

    x_nhwc = jnp.transpose(x_nchw, (0, 2, 3, 1)).astype(jnp.float32)
    x_flat = x_nhwc.reshape(M, C)

    # conv1 -> bn1 -> selu            (no zeros residual, no bias)
    raw1, s1, q1 = _conv3x3(x_nhwc, params["w1"], tr)
    h1 = _bn_apply(raw1, s1, q1, params["g1"], params["beta1"], None, M, C)

    # conv2 -> bn2 -> (+x) -> selu    (h1 -> NHWC reshape is free: same layout)
    raw2, s2, q2 = _conv3x3(h1.reshape(N, H, W, C), params["w2"], tr)
    out = _bn_apply(raw2, s2, q2, params["g2"], params["beta2"], x_flat, M, C)

    return jnp.transpose(out.reshape(N, H, W, C), (0, 3, 1, 2))   # back to NCHW


# -----------------------------------------------------------------------------
# pure-JAX reference (lax conv, includes the bias the kernel analytically drops)
# -----------------------------------------------------------------------------
def _reference(x_nchw, params):
    def conv(x, w_taps, b):  # w_taps: (9, Cin, Cout) tap-major (dy, dx)
        C = x.shape[1]
        w = jnp.transpose(w_taps.reshape(3, 3, C, C), (3, 2, 0, 1))  # OIHW
        y = jax.lax.conv_general_dilated(
            x, w, window_strides=(1, 1), padding=((1, 1), (1, 1)),
            dimension_numbers=("NCHW", "OIHW", "NCHW"))
        return y + b.reshape(1, C, 1, 1)

    def bn(x, g, beta):
        mean = jnp.mean(x, axis=(0, 2, 3), keepdims=True)
        var = jnp.mean((x - mean) ** 2, axis=(0, 2, 3), keepdims=True)
        return (x - mean) * jax.lax.rsqrt(var + BN_EPS) * g.reshape(1, -1, 1, 1) \
               + beta.reshape(1, -1, 1, 1)

    def selu(x):
        return SELU_SCALE * jnp.where(
            x > 0, x, SELU_ALPHA * (jnp.exp(jnp.minimum(x, 0.0)) - 1.0))

    h = selu(bn(conv(x_nchw, params["w1"], params["b1"]), params["g1"], params["beta1"]))
    h = bn(conv(h, params["w2"], params["b2"]), params["g2"], params["beta2"])
    return selu(h + x_nchw)


def make_params(key, hidden_size):
    C = hidden_size
    ks = jax.random.split(key, 8)
    scale = 1.0 / jnp.sqrt(9.0 * C)  # roughly kaiming-uniform bound
    return {
        # per-tap (dy, dx) weight matrices, tap-major: (9, C_in, C_out)
        "w1": jax.random.uniform(ks[0], (9, C, C), jnp.float32, -scale, scale),
        "b1": jax.random.uniform(ks[1], (1, C), jnp.float32, -scale, scale),
        "w2": jax.random.uniform(ks[2], (9, C, C), jnp.float32, -scale, scale),
        "b2": jax.random.uniform(ks[3], (1, C), jnp.float32, -scale, scale),
        "g1": 1.0 + 0.1 * jax.random.normal(ks[4], (1, C), jnp.float32),
        "beta1": 0.1 * jax.random.normal(ks[5], (1, C), jnp.float32),
        "g2": 1.0 + 0.1 * jax.random.normal(ks[6], (1, C), jnp.float32),
        "beta2": 0.1 * jax.random.normal(ks[7], (1, C), jnp.float32),
    }


if __name__ == "__main__":
    key = jax.random.PRNGKey(0)
    k_x, k_p = jax.random.split(key)

    hidden_size = 32
    N, H, W = 2, 16, 16
    x = jax.random.normal(k_x, (N, hidden_size, H, W), jnp.float32)  # NCHW
    params = make_params(k_p, hidden_size)

    # block_rows=8 forces 2 row-tiles per image so the halo / per-tile-stats path
    # across tile boundaries is exercised even at this toy size.
    out = jax.block_until_ready(residual_block(x, params, block_rows=8))
    assert out.shape == x.shape and out.dtype == jnp.float32

    ref = jax.block_until_ready(_reference(x, params))
    err = jnp.max(jnp.abs(out - ref))
    assert jnp.allclose(out, ref, rtol=2e-3, atol=2e-3), f"max abs err {err}"

    print("KERNEL_OK")
</pallas_src>

<mosaic_0001>
module attributes {stable_mosaic.version = 11 : i64} {
  func.func @_conv3x3_kernel(%arg0: i32, %arg1: memref<1x10x18x32xf32, #tpu.memory_space<vmem>>, %arg2: memref<288x32xf32, #tpu.memory_space<vmem>>, %arg3: memref<128x32xf32, #tpu.memory_space<vmem>>, %arg4: memref<1x1x32xf32, #tpu.memory_space<vmem>>, %arg5: memref<1x1x32xf32, #tpu.memory_space<vmem>>) attributes {dimension_semantics = [#tpu.dimension_semantics<parallel>], iteration_bounds = array<i64: 4>, scalar_prefetch = 0 : i64, scratch_operands = 0 : i64, tpu.core_type = #tpu.core_type<tc>, window_params = [{transform_indices = @transform_0, window_bounds = array<i64: 1, 10, 18, 32>}, {pipeline_mode = #tpu.pipeline_mode<synchronous>, transform_indices = @transform_1, window_bounds = array<i64: 288, 32>}, {transform_indices = @transform_2, window_bounds = array<i64: 128, 32>}, {transform_indices = @transform_3, window_bounds = array<i64: 1, 1, 32>}, {transform_indices = @transform_4, window_bounds = array<i64: 1, 1, 32>}]} {
    %c0 = arith.constant 0 : index
    %c0_0 = arith.constant 0 : index
    %c0_1 = arith.constant 0 : index
    %c0_2 = arith.constant 0 : index
    %0 = vector.load %arg1[%c0, %c0_0, %c0_1, %c0_2] : memref<1x10x18x32xf32, #tpu.memory_space<vmem>>, vector<1x10x18x32xf32>
    %1 = vector.shape_cast %0 : vector<1x10x18x32xf32> to vector<10x18x32xf32>
    %2 = vector.extract_strided_slice %1 {offsets = [0, 0, 0], sizes = [8, 16, 32], strides = [1, 1, 1]} : vector<10x18x32xf32> to vector<8x16x32xf32>
    %3 = vector.shape_cast %2 : vector<8x16x32xf32> to vector<128x32xf32>
    %4 = vector.extract_strided_slice %1 {offsets = [0, 1, 0], sizes = [8, 16, 32], strides = [1, 1, 1]} : vector<10x18x32xf32> to vector<8x16x32xf32>
    %5 = vector.shape_cast %4 : vector<8x16x32xf32> to vector<128x32xf32>
    %6 = vector.extract_strided_slice %1 {offsets = [0, 2, 0], sizes = [8, 16, 32], strides = [1, 1, 1]} : vector<10x18x32xf32> to vector<8x16x32xf32>
    %7 = vector.shape_cast %6 : vector<8x16x32xf32> to vector<128x32xf32>
    %8 = vector.extract_strided_slice %1 {offsets = [1, 0, 0], sizes = [8, 16, 32], strides = [1, 1, 1]} : vector<10x18x32xf32> to vector<8x16x32xf32>
    %9 = vector.shape_cast %8 : vector<8x16x32xf32> to vector<128x32xf32>
    %10 = vector.extract_strided_slice %1 {offsets = [1, 1, 0], sizes = [8, 16, 32], strides = [1, 1, 1]} : vector<10x18x32xf32> to vector<8x16x32xf32>
    %11 = vector.shape_cast %10 : vector<8x16x32xf32> to vector<128x32xf32>
    %12 = vector.extract_strided_slice %1 {offsets = [1, 2, 0], sizes = [8, 16, 32], strides = [1, 1, 1]} : vector<10x18x32xf32> to vector<8x16x32xf32>
    %13 = vector.shape_cast %12 : vector<8x16x32xf32> to vector<128x32xf32>
    %14 = vector.extract_strided_slice %1 {offsets = [2, 0, 0], sizes = [8, 16, 32], strides = [1, 1, 1]} : vector<10x18x32xf32> to vector<8x16x32xf32>
    %15 = vector.shape_cast %14 : vector<8x16x32xf32> to vector<128x32xf32>
    %16 = vector.extract_strided_slice %1 {offsets = [2, 1, 0], sizes = [8, 16, 32], strides = [1, 1, 1]} : vector<10x18x32xf32> to vector<8x16x32xf32>
    %17 = vector.shape_cast %16 : vector<8x16x32xf32> to vector<128x32xf32>
    %18 = vector.extract_strided_slice %1 {offsets = [2, 2, 0], sizes = [8, 16, 32], strides = [1, 1, 1]} : vector<10x18x32xf32> to vector<8x16x32xf32>
    %19 = vector.shape_cast %18 : vector<8x16x32xf32> to vector<128x32xf32>
    %20 = tpu.concatenate %3, %5, %7, %9, %11, %13, %15, %17, %19 in 1 : vector<128x32xf32>, vector<128x32xf32>, vector<128x32xf32>, vector<128x32xf32>, vector<128x32xf32>, vector<128x32xf32>, vector<128x32xf32>, vector<128x32xf32>, vector<128x32xf32> -> vector<128x288xf32>
    %c0_3 = arith.constant 0 : index
    %c0_4 = arith.constant 0 : index
    %21 = vector.load %arg2[%c0_3, %c0_4] : memref<288x32xf32, #tpu.memory_space<vmem>>, vector<288x32xf32>
    %cst = arith.constant dense<0.000000e+00> : vector<128x32xf32>
    %22 = tpu.matmul %20, %21, %cst {dimension_numbers = #tpu.dot_dimension_numbers<[1], [0], [0], [1], [0, 0, 1, 1], [], []>} : vector<128x288xf32>, vector<288x32xf32>, vector<128x32xf32> -> vector<128x32xf32>
    %c0_5 = arith.constant 0 : index
    %c0_6 = arith.constant 0 : index
    %23 = vector.load %arg3[%c0_5, %c0_6] : memref<128x32xf32, #tpu.memory_space<vmem>>, vector<128x32xf32>
    tpu.vector_store %arg3[%c0_5, %c0_6], %22 {strides = array<i32>} : memref<128x32xf32, #tpu.memory_space<vmem>>, vector<128x32xf32>,
    %cst_7 = arith.constant dense<0.000000e+00> : vector<32xf32>
    %24 = vector.multi_reduction <add>, %22, %cst_7 [0] : vector<128x32xf32> to vector<32xf32>
    %25 = vector.shape_cast %24 : vector<32xf32> to vector<1x32xf32>
    %26 = vector.shape_cast %25 : vector<1x32xf32> to vector<1x1x32xf32>
    %c0_8 = arith.constant 0 : index
    %c0_9 = arith.constant 0 : index
    %c0_10 = arith.constant 0 : index
    %27 = vector.load %arg4[%c0_8, %c0_9, %c0_10] : memref<1x1x32xf32, #tpu.memory_space<vmem>>, vector<1x1x32xf32>
    tpu.vector_store %arg4[%c0_8, %c0_9, %c0_10], %26 {strides = array<i32>} : memref<1x1x32xf32, #tpu.memory_space<vmem>>, vector<1x1x32xf32>,
    %28 = arith.mulf %22, %22 : vector<128x32xf32>
    %cst_11 = arith.constant dense<0.000000e+00> : vector<32xf32>
    %29 = vector.multi_reduction <add>, %28, %cst_11 [0] : vector<128x32xf32> to vector<32xf32>
    %30 = vector.shape_cast %29 : vector<32xf32> to vector<1x32xf32>
    %31 = vector.shape_cast %30 : vector<1x32xf32> to vector<1x1x32xf32>
    %c0_12 = arith.constant 0 : index
    %c0_13 = arith.constant 0 : index
    %c0_14 = arith.constant 0 : index
    %32 = vector.load %arg5[%c0_12, %c0_13, %c0_14] : memref<1x1x32xf32, #tpu.memory_space<vmem>>, vector<1x1x32xf32>
    tpu.vector_store %arg5[%c0_12, %c0_13, %c0_14], %31 {strides = array<i32>} : memref<1x1x32xf32, #tpu.memory_space<vmem>>, vector<1x1x32xf32>,
    return
  }
  func.func @transform_0(%arg0: i32) -> (i32, i32, i32, i32) {
    %c0_i32 = arith.constant 0 : i32
    %c0_i32_0 = arith.constant 0 : i32
    %c0_i32_1 = arith.constant 0 : i32
    %c0_i32_2 = arith.constant 0 : i32
    return %arg0, %c0_i32, %c0_i32_0, %c0_i32_1 : i32, i32, i32, i32
  }
  func.func @transform_1(%arg0: i32) -> (i32, i32) {
    %c0_i32 = arith.constant 0 : i32
    %c0_i32_0 = arith.constant 0 : i32
    %c0_i32_1 = arith.constant 0 : i32
    return %c0_i32, %c0_i32_0 : i32, i32
  }
  func.func @transform_2(%arg0: i32) -> (i32, i32) {
    %c0_i32 = arith.constant 0 : i32
    %c0_i32_0 = arith.constant 0 : i32
    return %arg0, %c0_i32 : i32, i32
  }
  func.func @transform_3(%arg0: i32) -> (i32, i32, i32) {
    %c0_i32 = arith.constant 0 : i32
    %c0_i32_0 = arith.constant 0 : i32
    %c0_i32_1 = arith.constant 0 : i32
    return %arg0, %c0_i32, %c0_i32_0 : i32, i32, i32
  }
  func.func @transform_4(%arg0: i32) -> (i32, i32, i32) {
    %c0_i32 = arith.constant 0 : i32
    %c0_i32_0 = arith.constant 0 : i32
    %c0_i32_1 = arith.constant 0 : i32
    return %arg0, %c0_i32, %c0_i32_0 : i32, i32, i32
  }
}

module attributes {stable_mosaic.version = 11 : i64} {
  func.func @_bn_act_kernel(%arg0: i32, %arg1: memref<128x128xf32, #tpu.memory_space<vmem>>, %arg2: memref<1x128xf32, #tpu.memory_space<vmem>>, %arg3: memref<1x128xf32, #tpu.memory_space<vmem>>, %arg4: memref<128x128xf32, #tpu.memory_space<vmem>>) attributes {dimension_semantics = [#tpu.dimension_semantics<parallel>], iteration_bounds = array<i64: 1>, scalar_prefetch = 0 : i64, scratch_operands = 0 : i64, tpu.core_type = #tpu.core_type<tc>, window_params = [{transform_indices = @transform_0, window_bounds = array<i64: 128, 128>}, {pipeline_mode = #tpu.pipeline_mode<synchronous>, transform_indices = @transform_1, window_bounds = array<i64: 1, 128>}, {pipeline_mode = #tpu.pipeline_mode<synchronous>, transform_indices = @transform_2, window_bounds = array<i64: 1, 128>}, {transform_indices = @transform_3, window_bounds = array<i64: 128, 128>}]} {
    %c0 = arith.constant 0 : index
    %c0_0 = arith.constant 0 : index
    %0 = vector.load %arg1[%c0, %c0_0] : memref<128x128xf32, #tpu.memory_space<vmem>>, vector<128x128xf32>
    %c0_1 = arith.constant 0 : index
    %c0_2 = arith.constant 0 : index
    %1 = vector.load %arg2[%c0_1, %c0_2] : memref<1x128xf32, #tpu.memory_space<vmem>>, vector<1x128xf32>
    %2 = vector.broadcast %1 : vector<1x128xf32> to vector<128x128xf32>
    %3 = arith.mulf %0, %2 : vector<128x128xf32>
    %c0_3 = arith.constant 0 : index
    %c0_4 = arith.constant 0 : index
    %4 = vector.load %arg3[%c0_3, %c0_4] : memref<1x128xf32, #tpu.memory_space<vmem>>, vector<1x128xf32>
    %5 = vector.broadcast %4 : vector<1x128xf32> to vector<128x128xf32>
    %6 = arith.addf %3, %5 : vector<128x128xf32>
    %cst = arith.constant 0.000000e+00 : f32
    %7 = vector.broadcast %cst : f32 to vector<128x128xf32>
    %8 = arith.cmpf ogt, %6, %7 : vector<128x128xf32>
    %cst_5 = arith.constant 0.000000e+00 : f32
    %9 = vector.broadcast %cst_5 : f32 to vector<128x128xf32>
    %10 = arith.minimumf %6, %9 : vector<128x128xf32>
    %11 = math.exp %10 : vector<128x128xf32>
    %cst_6 = arith.constant 1.000000e+00 : f32
    %12 = vector.broadcast %cst_6 : f32 to vector<128x128xf32>
    %13 = arith.subf %11, %12 : vector<128x128xf32>
    %cst_7 = arith.constant 1.67326319 : f32
    %14 = vector.broadcast %cst_7 : f32 to vector<128x128xf32>
    %15 = arith.mulf %14, %13 : vector<128x128xf32>
    %16 = arith.select %8, %6, %15 : vector<128x128xi1>, vector<128x128xf32>
    %cst_8 = arith.constant 1.05070102 : f32
    %17 = vector.broadcast %cst_8 : f32 to vector<128x128xf32>
    %18 = arith.mulf %17, %16 : vector<128x128xf32>
    %c0_9 = arith.constant 0 : index
    %c0_10 = arith.constant 0 : index
    %19 = vector.load %arg4[%c0_9, %c0_10] : memref<128x128xf32, #tpu.memory_space<vmem>>, vector<128x128xf32>
    tpu.vector_store %arg4[%c0_9, %c0_10], %18 {strides = array<i32>} : memref<128x128xf32, #tpu.memory_space<vmem>>, vector<128x128xf32>,
    return
  }
  func.func @transform_0(%arg0: i32) -> (i32, i32) {
    %c0_i32 = arith.constant 0 : i32
    %c0_i32_0 = arith.constant 0 : i32
    return %arg0, %c0_i32 : i32, i32
  }
  func.func @transform_1(%arg0: i32) -> (i32, i32) {
    %c0_i32 = arith.constant 0 : i32
    %c0_i32_0 = arith.constant 0 : i32
    %c0_i32_1 = arith.constant 0 : i32
    return %c0_i32, %c0_i32_0 : i32, i32
  }
  func.func @transform_2(%arg0: i32) -> (i32, i32) {
    %c0_i32 = arith.constant 0 : i32
    %c0_i32_0 = arith.constant 0 : i32
    %c0_i32_1 = arith.constant 0 : i32
    return %c0_i32, %c0_i32_0 : i32, i32
  }
  func.func @transform_3(%arg0: i32) -> (i32, i32) {
    %c0_i32 = arith.constant 0 : i32
    %c0_i32_0 = arith.constant 0 : i32
    return %arg0, %c0_i32 : i32, i32
  }
}

module attributes {stable_mosaic.version = 11 : i64} {
  func.func @_bn_res_act_kernel(%arg0: i32, %arg1: memref<128x128xf32, #tpu.memory_space<vmem>>, %arg2: memref<128x128xf32, #tpu.memory_space<vmem>>, %arg3: memref<1x128xf32, #tpu.memory_space<vmem>>, %arg4: memref<1x128xf32, #tpu.memory_space<vmem>>, %arg5: memref<128x128xf32, #tpu.memory_space<vmem>>) attributes {dimension_semantics = [#tpu.dimension_semantics<parallel>], iteration_bounds = array<i64: 1>, scalar_prefetch = 0 : i64, scratch_operands = 0 : i64, tpu.core_type = #tpu.core_type<tc>, window_params = [{transform_indices = @transform_0, window_bounds = array<i64: 128, 128>}, {transform_indices = @transform_1, window_bounds = array<i64: 128, 128>}, {pipeline_mode = #tpu.pipeline_mode<synchronous>, transform_indices = @transform_2, window_bounds = array<i64: 1, 128>}, {pipeline_mode = #tpu.pipeline_mode<synchronous>, transform_indices = @transform_3, window_bounds = array<i64: 1, 128>}, {transform_indices = @transform_4, window_bounds = array<i64: 128, 128>}]} {
    %c0 = arith.constant 0 : index
    %c0_0 = arith.constant 0 : index
    %0 = vector.load %arg1[%c0, %c0_0] : memref<128x128xf32, #tpu.memory_space<vmem>>, vector<128x128xf32>
    %c0_1 = arith.constant 0 : index
    %c0_2 = arith.constant 0 : index
    %1 = vector.load %arg3[%c0_1, %c0_2] : memref<1x128xf32, #tpu.memory_space<vmem>>, vector<1x128xf32>
    %2 = vector.broadcast %1 : vector<1x128xf32> to vector<128x128xf32>
    %3 = arith.mulf %0, %2 : vector<128x128xf32>
    %c0_3 = arith.constant 0 : index
    %c0_4 = arith.constant 0 : index
    %4 = vector.load %arg4[%c0_3, %c0_4] : memref<1x128xf32, #tpu.memory_space<vmem>>, vector<1x128xf32>
    %5 = vector.broadcast %4 : vector<1x128xf32> to vector<128x128xf32>
    %6 = arith.addf %3, %5 : vector<128x128xf32>
    %c0_5 = arith.constant 0 : index
    %c0_6 = arith.constant 0 : index
    %7 = vector.load %arg2[%c0_5, %c0_6] : memref<128x128xf32, #tpu.memory_space<vmem>>, vector<128x128xf32>
    %8 = arith.addf %6, %7 : vector<128x128xf32>
    %cst = arith.constant 0.000000e+00 : f32
    %9 = vector.broadcast %cst : f32 to vector<128x128xf32>
    %10 = arith.cmpf ogt, %8, %9 : vector<128x128xf32>
    %cst_7 = arith.constant 0.000000e+00 : f32
    %11 = vector.broadcast %cst_7 : f32 to vector<128x128xf32>
    %12 = arith.minimumf %8, %11 : vector<128x128xf32>
    %13 = math.exp %12 : vector<128x128xf32>
    %cst_8 = arith.constant 1.000000e+00 : f32
    %14 = vector.broadcast %cst_8 : f32 to vector<128x128xf32>
    %15 = arith.subf %13, %14 : vector<128x128xf32>
    %cst_9 = arith.constant 1.67326319 : f32
    %16 = vector.broadcast %cst_9 : f32 to vector<128x128xf32>
    %17 = arith.mulf %16, %15 : vector<128x128xf32>
    %18 = arith.select %10, %8, %17 : vector<128x128xi1>, vector<128x128xf32>
    %cst_10 = arith.constant 1.05070102 : f32
    %19 = vector.broadcast %cst_10 : f32 to vector<128x128xf32>
    %20 = arith.mulf %19, %18 : vector<128x128xf32>
    %c0_11 = arith.constant 0 : index
    %c0_12 = arith.constant 0 : index
    %21 = vector.load %arg5[%c0_11, %c0_12] : memref<128x128xf32, #tpu.memory_space<vmem>>, vector<128x128xf32>
    tpu.vector_store %arg5[%c0_11, %c0_12], %20 {strides = array<i32>} : memref<128x128xf32, #tpu.memory_space<vmem>>, vector<128x128xf32>,
    return
  }
  func.func @transform_0(%arg0: i32) -> (i32, i32) {
    %c0_i32 = arith.constant 0 : i32
    %c0_i32_0 = arith.constant 0 : i32
    return %arg0, %c0_i32 : i32, i32
  }
  func.func @transform_1(%arg0: i32) -> (i32, i32) {
    %c0_i32 = arith.constant 0 : i32
    %c0_i32_0 = arith.constant 0 : i32
    return %arg0, %c0_i32 : i32, i32
  }
  func.func @transform_2(%arg0: i32) -> (i32, i32) {
    %c0_i32 = arith.constant 0 : i32
    %c0_i32_0 = arith.constant 0 : i32
    %c0_i32_1 = arith.constant 0 : i32
    return %c0_i32, %c0_i32_0 : i32, i32
  }
  func.func @transform_3(%arg0: i32) -> (i32, i32) {
    %c0_i32 = arith.constant 0 : i32
    %c0_i32_0 = arith.constant 0 : i32
    %c0_i32_1 = arith.constant 0 : i32
    return %c0_i32, %c0_i32_0 : i32, i32
  }
  func.func @transform_4(%arg0: i32) -> (i32, i32) {
    %c0_i32 = arith.constant 0 : i32
    %c0_i32_0 = arith.constant 0 : i32
    return %arg0, %c0_i32 : i32, i32
  }
}

</mosaic_0001>

<bundles_post_ra>
// kernel: tile.23
= control target key start
LH: loop header
LB: loop body
LE: loop exit
PB: predicated region body
PF: predicated region fallthrough
CT: control target
= control target key end

     0   :  { %s22_s0 = inlined_call_operand.vmem [shape: f32[32], index: 0, kind: input, shape index: {}]   ;;  %s23_s1 = inlined_call_operand.vmem [shape: f32[4,32], index: 1, kind: output, shape index: {}]  }
   0x1   :  { %v4_v0 = vld [vmem:[%s22_s0] ss:$0 sm:$0xff] }
   0x2   :  { %5 = vst [vmem:[%s23_s1] sm:$0xf] %v4_v0 }

// kernel: tile.24
= control target key start
LH: loop header
LB: loop body
LE: loop exit
PB: predicated region body
PF: predicated region fallthrough
CT: control target
= control target key end

     0   :  { %s37_s8 = smov 32   ;;  %s38_s9 = smov 64   ;;  %vm7_vm0 = vcmask 261120   ;;  %vm13_vm1 = vcmask 1048320   ;;  %vm19_vm2 = vcmask 785920   ;;  %vm25_vm3 = vcmask 523520   ;;  %s55_s0 = inlined_call_operand.vmem [shape: f32[4,32], index: 0, kind: input, shape index: {}]   ;;  %s56_s1 = inlined_call_operand.vmem [shape: f32[1,128], index: 1, kind: output, shape index: {}]  }
   0x1   :  { %v4_v0 = vld [vmem:[%s55_s0] sm:$0xf]  ;;  %s36_s0 = smov 96  }
   0x2   :  { %5 = vst [vmem:[#allocation1] sm:$0xf] %v4_v0 }
   0x9   :  { %v10_v1 = vld [vmem:[#allocation1 + $0x3] sm:$0x1]   ;;  %v22_v2 = vld [vmem:[#allocation1 + $0x1] sm:$0x1]   ;;  %v16_v3 = vld [vmem:[#allocation1 + $0x2] sm:$0x1]  }
   0xa   :  { %11 = vrot.lane.b32.xlu0 %v10_v1, %s36_s0  ;;  %23 = vrot.lane.b32.xlu1 %v22_v2, %s37_s8  ;;  %v6_v4 = vld [vmem:[#allocation1] sm:$0x1]  }
   0xb   :  { %8 = vst.msk [vmem:[#allocation0] sm:$0x1] %vm7_vm0, %v6_v4  }
  0x12   :  { %17 = vrot.lane.b32.xlu0 %v16_v3, %s38_s9 }
  0x7c   :  { %v12_v5 = vpop.permute.xlu0 %11   ;;  %v24_v6 = vpop.permute.xlu1 %23  }
  0x7d   :  { %14 = vst.msk [vmem:[#allocation0] sm:$0x1] %vm13_vm1, %v12_v5  }
  0x84   :  { %v18_v7 = vpop.permute.xlu0 %17  }
  0x85   :  { %20 = vst.msk [vmem:[#allocation0] sm:$0x1] %vm19_vm2, %v18_v7  }
  0x86   :  { %26 = vst.msk [vmem:[#allocation0] sm:$0x1] %vm25_vm3, %v24_v6  }
  0x8d   :  { %v29_v8 = vld [vmem:[#allocation0] sm:$0x1] }
  0x8e   :  { %32 = vst [vmem:[%s56_s1] sm:$0x1] %v29_v8 }

// kernel: residual_block.5
= control target key start
LH: loop header
LB: loop body
LE: loop exit
PB: predicated region body
PF: predicated region fallthrough
CT: control target
= control target key end

     0   :  { %s507_s0 = inlined_call_operand.vmem [shape: f32[128,128], index: 0, kind: input, shape index: {}]   ;;  %s508_s1 = inlined_call_operand.vmem [shape: f32[1,128], index: 1, kind: input, shape index: {}]   ;;  %s509_s2 = inlined_call_operand.vmem [shape: f32[1,128], index: 2, kind: input, shape index: {}]   ;;  %s510_s3 = inlined_call_operand.vmem [shape: f32[128,128], index: 3, kind: output, shape index: {}]  }
   0x1   :  { %v14_v0 = vld [vmem:[%s507_s0] sm:$0xff]  ;;  %v15_v3 = vld [vmem:[%s507_s0 + $0x8] sm:$0xff]  ;;  %v16_v6 = vld [vmem:[%s507_s0 + $0x10] sm:$0xff] }
   0x2   :  { %v294_v1 = vld [vmem:[%s508_s1] ss:$0 sm:$0xff]  ;;  %v17_v7 = vld [vmem:[%s507_s0 + $0x18] sm:$0xff]  ;;  %v19_v12 = vld [vmem:[%s507_s0 + $0x28] sm:$0xff] }
   0x3   :  { %v299_v2 = vld [vmem:[%s509_s2] ss:$0 sm:$0xff]  ;;  %v34_v4 = vmul.f32 %v294_v1, %v14_v0  ;;  %v35_v5 = vmul.f32 %v294_v1, %v15_v3  ;;  %v36_v9 = vmul.f32 %v294_v1, %v16_v6  ;;  %v37_v10 = vmul.f32 %v294_v1, %v17_v7  ;;  %v20_v13 = vld [vmem:[%s507_s0 + $0x30] sm:$0xff]  ;;  %v21_v14 = vld [vmem:[%s507_s0 + $0x38] sm:$0xff] }
   0x4   :  { %v18_v8 = vld [vmem:[%s507_s0 + $0x20] sm:$0xff]  ;;  %v39_v17 = vmul.f32 %v294_v1, %v19_v12  ;;  %v40_v21 = vmul.f32 %v294_v1, %v20_v13  ;;  %v41_v24 = vmul.f32 %v294_v1, %v21_v14  ;;  %v23_v38 = vld [vmem:[%s507_s0 + $0x48] sm:$0xff]  ;;  %v24_v40 = vld [vmem:[%s507_s0 + $0x50] sm:$0xff] }
   0x5   :  { %v38_v11 = vmul.f32 %v294_v1, %v18_v8  ;;  %v328_v15 = vadd.f32 %v299_v2, %v34_v4  ;;  %v331_v16 = vadd.f32 %v299_v2, %v35_v5  ;;  %v335_v18 = vadd.f32 %v299_v2, %v36_v9  ;;  %v22_v27 = vld [vmem:[%s507_s0 + $0x40] sm:$0xff]  ;;  %v25_v46 = vld [vmem:[%s507_s0 + $0x58] sm:$0xff] }
   0x6   :  { %v338_v19 = vadd.f32 %v299_v2, %v37_v10  ;;  %v354_v33 = vadd.f32 %v299_v2, %v39_v17  ;;  %v357_v34 = vadd.f32 %v299_v2, %v40_v21  ;;  %v360_v36 = vadd.f32 %v299_v2, %v41_v24  ;;  %v26_v47 = vld [vmem:[%s507_s0 + $0x60] sm:$0xff] }
   0x7   :  { %v341_v20 = vadd.f32 %v299_v2, %v38_v11  ;;  %v86_v22 = vmin.f32 %v328_v15, 0.0  ;;  %v87_v23 = vmin.f32 %v331_v16, 0.0  ;;  %v88_v25 = vmin.f32 %v335_v18, 0.0 }
   0x8   :  { %v89_v26 = vmin.f32 %v338_v19, 0.0  ;;  %v42_v37 = vmul.f32 %v294_v1, %v22_v27  ;;  %vm70_vm0 = vcmp.gt.f32.partialorder %v328_v15, 0.0  ;;  %vm71_vm1 = vcmp.gt.f32.partialorder %v331_v16, 0.0 }
   0x9   :  { %v102_v28 = vmul.f32 1.442695, %v86_v22  ;;  %v104_v29 = vmul.f32 1.442695, %v87_v23  ;;  %v90_v30 = vmin.f32 %v341_v20, 0.0  ;;  %v91_v39 = vmin.f32 %v354_v33, 0.0 }
   0xa   :  { %v106_v31 = vmul.f32 1.442695, %v88_v25  ;;  %v108_v32 = vmul.f32 1.442695, %v89_v26  ;;  %vm72_vm2 = vcmp.gt.f32.partialorder %v335_v18, 0.0  ;;  %v92_v41 = vmin.f32 %v357_v34, 0.0 }
   0xb   :  { %236 = vpow2.f32 %v102_v28  ;;  %v110_v35 = vmul.f32 1.442695, %v90_v30  ;;  %v93_v42 = vmin.f32 %v360_v36, 0.0  ;;  %vm73_vm3 = vcmp.gt.f32.partialorder %v338_v19, 0.0 }
   0xc   :  { %238 = vpow2.f32 %v104_v29  ;;  %v112_v43 = vmul.f32 1.442695, %v91_v39  ;;  %v377_v44 = vadd.f32 %v299_v2, %v42_v37  ;;  %v43_v45 = vmul.f32 %v294_v1, %v23_v38  ;;  %v27_v39 = vld [vmem:[%s507_s0 + $0x68] sm:$0xff] }
   0xd   :  { %240 = vpow2.f32 %v106_v31  ;;  %vm74_vm4 = vcmp.gt.f32.partialorder %v341_v20, 0.0  ;;  %v114_v48 = vmul.f32 1.442695, %v92_v41  ;;  %v116_v49 = vmul.f32 1.442695, %v93_v42 }
   0xe   :  { %242 = vpow2.f32 %v108_v32  ;;  %v44_v50 = vmul.f32 %v294_v1, %v24_v40  ;;  %vm75_vm5 = vcmp.gt.f32.partialorder %v354_v33, 0.0  ;;  %v94_v51 = vmin.f32 %v377_v44, 0.0 }
   0xf   :  { %244 = vpow2.f32 %v110_v35  ;;  %v391_v52 = vadd.f32 %v299_v2, %v43_v45  ;;  %v45_v55 = vmul.f32 %v294_v1, %v25_v46  ;;  %v46_v56 = vmul.f32 %v294_v1, %v26_v47  ;;  %v28_v45 = vld [vmem:[%s507_s0 + $0x70] sm:$0xff] }
  0x10   :  { %246 = vpow2.f32 %v112_v43  ;;  %v394_v54 = vadd.f32 %v299_v2, %v44_v50  ;;  %vm76_vm6 = vcmp.gt.f32.partialorder %v357_v34, 0.0  ;;  %v118_v59 = vmul.f32 1.442695, %v94_v51 }
  0x11   :  { %v237_v53 = vpop.eup %236  ;;  %248 = vpow2.f32 %v114_v48  ;;  %vm77_vm7 = vcmp.gt.f32.partialorder %v360_v36, 0.0  ;;  %v95_v62 = vmin.f32 %v391_v52, 0.0  ;;  %v403_v5 = vadd.f32 %v299_v2, %v45_v55 }
  0x12   :  { %v239_v57 = vpop.eup %238  ;;  %v218_v58 = vadd.f32 -1.0, %v237_v53  ;;  %250 = vpow2.f32 %v116_v49  ;;  %v96_v63 = vmin.f32 %v394_v54, 0.0  ;;  %v406_v10 = vadd.f32 %v299_v2, %v46_v56 }
  0x13   :  { %v241_v60 = vpop.eup %240  ;;  %v219_v61 = vadd.f32 -1.0, %v239_v57  ;;  %252 = vpow2.f32 %v118_v59  ;;  %v120_v9 = vmul.f32 1.442695, %v95_v62  ;;  %vm78_vm8 = vcmp.gt.f32.partialorder %v377_v44, 0.0 }
  0x14   :  { %v243_v0 = vpop.eup %242  ;;  %v150_v3 = vmul.f32 1.6732632, %v218_v58  ;;  %v220_v4 = vadd.f32 -1.0, %v241_v60  ;;  %v122_v17 = vmul.f32 1.442695, %v96_v63  ;;  %v97_v48 = vmin.f32 %v403_v5, 0.0 }
  0x15   :  { %v245_v6 = vpop.eup %244  ;;  %v151_v7 = vmul.f32 1.6732632, %v219_v61  ;;  %v221_v8 = vadd.f32 -1.0, %v243_v0  ;;  %254 = vpow2.f32 %v120_v9  ;;  %v98_v50 = vmin.f32 %v406_v10, 0.0 }
  0x16   :  { %v247_v11 = vpop.eup %246  ;;  %v166_v12 = vsel %vm70_vm0, %v328_v15, %v150_v3  ;;  %v152_v13 = vmul.f32 1.6732632, %v220_v4  ;;  %v222_v14 = vadd.f32 -1.0, %v245_v6  ;;  %256 = vpow2.f32 %v122_v17 }
  0x17   :  { %v249_v21 = vpop.eup %248  ;;  %v182_v22 = vmul.f32 1.050701, %v166_v12  ;;  %v167_v23 = vsel %vm71_vm1, %v331_v16, %v151_v7  ;;  %v153_v24 = vmul.f32 1.6732632, %v221_v8  ;;  %v223_v25 = vadd.f32 -1.0, %v247_v11 }
  0x18   :  { %v251_v26 = vpop.eup %250  ;;  %v183_v27 = vmul.f32 1.050701, %v167_v23  ;;  %v168_v28 = vsel %vm72_vm2, %v335_v18, %v152_v13  ;;  %v154_v29 = vmul.f32 1.6732632, %v222_v14  ;;  %v224_v30 = vadd.f32 -1.0, %v249_v21 }
  0x19   :  { %198 = vst [vmem:[%s510_s3] sm:$0xff] %v182_v22  ;;  %v184_v15 = vmul.f32 1.050701, %v168_v28  ;;  %v169_v31 = vsel %vm73_vm3, %v338_v19, %v153_v24  ;;  %v155_v16 = vmul.f32 1.6732632, %v223_v25  ;;  %v225_v32 = vadd.f32 -1.0, %v251_v26  ;;  %v253_v35 = vpop.eup %252 }
  0x1a   :  { %199 = vst [vmem:[%s510_s3 + $0x8] sm:$0xff] %v183_v27  ;;  %v185_v37 = vmul.f32 1.050701, %v169_v31  ;;  %v170_v18 = vsel %vm74_vm4, %v341_v20, %v154_v29  ;;  %v156_v38 = vmul.f32 1.6732632, %v224_v30  ;;  %v226_v42 = vadd.f32 -1.0, %v253_v35 }
  0x1b   :  { %200 = vst [vmem:[%s510_s3 + $0x10] sm:$0xff] %v184_v15  ;;  %v186_v19 = vmul.f32 1.050701, %v170_v18  ;;  %v171_v40 = vsel %vm75_vm5, %v354_v33, %v155_v16  ;;  %v157_v41 = vmul.f32 1.6732632, %v225_v32  ;;  %v29_v33 = vld [vmem:[%s507_s0 + $0x78] sm:$0xff]  ;;  %v47_v51 = vmul.f32 %v294_v1, %v27_v39  ;;  %v255_v57 = vpop.eup %254 }
  0x1c   :  { %201 = vst [vmem:[%s510_s3 + $0x18] sm:$0xff] %v185_v37  ;;  %v187_v20 = vmul.f32 1.050701, %v171_v40  ;;  %v172_v43 = vsel %vm76_vm6, %v357_v34, %v156_v38  ;;  %v158_v47 = vmul.f32 1.6732632, %v226_v42  ;;  %v49_v56 = vmul.f32 %v294_v1, %v29_v33  ;;  %v257_v63 = vpop.eup %256 }
  0x1d   :  { %202 = vst [vmem:[%s510_s3 + $0x20] sm:$0xff] %v186_v19  ;;  %v188_v46 = vmul.f32 1.050701, %v172_v43  ;;  %v173_v34 = vsel %vm77_vm7, %v360_v36, %v157_v41  ;;  %v124_v55 = vmul.f32 1.442695, %v97_v48  ;;  %v48_v36 = vmul.f32 %v294_v1, %v28_v45 }
  0x1e   :  { %203 = vst [vmem:[%s510_s3 + $0x28] sm:$0xff] %v187_v20  ;;  %v189_v49 = vmul.f32 1.050701, %v173_v34  ;;  %v174_v53 = vsel %vm78_vm8, %v377_v44, %v158_v47  ;;  %v126_v59 = vmul.f32 1.442695, %v98_v50  ;;  %v67_v60 = vadd.f32 %v299_v2, %v47_v51 }
  0x1f   :  { %204 = vst [vmem:[%s510_s3 + $0x30] sm:$0xff] %v188_v46  ;;  %v190_v58 = vmul.f32 1.050701, %v174_v53  ;;  %v227_v61 = vadd.f32 -1.0, %v255_v57  ;;  %258 = vpow2.f32 %v124_v55  ;;  %v68_v62 = vadd.f32 %v299_v2, %v48_v36 }
  0x20   :  { %205 = vst [vmem:[%s510_s3 + $0x38] sm:$0xff] %v189_v49  ;;  %v69_v44 = vadd.f32 %v299_v2, %v49_v56  ;;  %vm79_vm9 = vcmp.gt.f32.partialorder %v391_v52, 0.0  ;;  %260 = vpow2.f32 %v126_v59  ;;  %v99_v1 = vmin.f32 %v67_v60, 0.0 }
  0x21   :  { %206 = vst [vmem:[%s510_s3 + $0x40] sm:$0xff] %v190_v58  ;;  %v159_v0 = vmul.f32 1.6732632, %v227_v61  ;;  %v228_v3 = vadd.f32 -1.0, %v257_v63  ;;  %v100_v4 = vmin.f32 %v68_v62, 0.0  ;;  %vm80_vm10 = vcmp.gt.f32.partialorder %v394_v54, 0.0 }
  0x22   :  { %v128_v6 = vmul.f32 1.442695, %v99_v1  ;;  %v101_v7 = vmin.f32 %v69_v44, 0.0  ;;  %vm81_vm11 = vcmp.gt.f32.partialorder %v403_v5, 0.0  ;;  %vm82_vm12 = vcmp.gt.f32.partialorder %v406_v10, 0.0 }
  0x23   :  { %v175_v8 = vsel %vm79_vm9, %v391_v52, %v159_v0  ;;  %v160_v9 = vmul.f32 1.6732632, %v228_v3  ;;  %v130_v2 = vmul.f32 1.442695, %v100_v4  ;;  %vm83_vm13 = vcmp.gt.f32.partialorder %v67_v60, 0.0 }
  0x24   :  { %v191_v11 = vmul.f32 1.050701, %v175_v8  ;;  %262 = vpow2.f32 %v128_v6  ;;  %v132_v12 = vmul.f32 1.442695, %v101_v7  ;;  %vm84_vm14 = vcmp.gt.f32.partialorder %v68_v62, 0.0 }
  0x25   :  { %v259_v13 = vpop.eup %258  ;;  %v176_v14 = vsel %vm80_vm10, %v394_v54, %v160_v9  ;;  %264 = vpow2.f32 %v130_v2  ;;  %vm85_vm15 = vcmp.gt.f32.partialorder %v69_v44, 0.0 }
  0x26   :  { %v261_v17 = vpop.eup %260  ;;  %207 = vst [vmem:[%s510_s3 + $0x48] sm:$0xff] %v191_v11  ;;  %v192_v21 = vmul.f32 1.050701, %v176_v14  ;;  %v229_v22 = vadd.f32 -1.0, %v259_v13  ;;  %266 = vpow2.f32 %v132_v12 }
  0x27   :  { %v230_v52 = vadd.f32 -1.0, %v261_v17 }
  0x28   :  { %208 = vst [vmem:[%s510_s3 + $0x50] sm:$0xff] %v192_v21  ;;  %v161_v23 = vmul.f32 1.6732632, %v229_v22 }
  0x29   :  { %v162_v54 = vmul.f32 1.6732632, %v230_v52 }
  0x2a   :  { %v263_v24 = vpop.eup %262  ;;  %v177_v25 = vsel %vm81_vm11, %v403_v5, %v161_v23 }
  0x2b   :  { %v265_v26 = vpop.eup %264  ;;  %v193_v27 = vmul.f32 1.050701, %v177_v25  ;;  %v178_v28 = vsel %vm82_vm12, %v406_v10, %v162_v54  ;;  %v231_v29 = vadd.f32 -1.0, %v263_v24 }
  0x2c   :  { %v267_v30 = vpop.eup %266  ;;  %v194_v15 = vmul.f32 1.050701, %v178_v28  ;;  %v232_v31 = vadd.f32 -1.0, %v265_v26 }
  0x2d   :  { %209 = vst [vmem:[%s510_s3 + $0x58] sm:$0xff] %v193_v27  ;;  %v163_v16 = vmul.f32 1.6732632, %v231_v29  ;;  %v233_v32 = vadd.f32 -1.0, %v267_v30 }
  0x2e   :  { %210 = vst [vmem:[%s510_s3 + $0x60] sm:$0xff] %v194_v15  ;;  %v164_v5 = vmul.f32 1.6732632, %v232_v31 }
  0x2f   :  { %v179_v35 = vsel %vm83_vm13, %v67_v60, %v163_v16  ;;  %v165_v10 = vmul.f32 1.6732632, %v233_v32 }
  0x30   :  { %v195_v37 = vmul.f32 1.050701, %v179_v35  ;;  %v180_v18 = vsel %vm84_vm14, %v68_v62, %v164_v5 }
  0x31   :  { %v196_v38 = vmul.f32 1.050701, %v180_v18  ;;  %v181_v39 = vsel %vm85_vm15, %v69_v44, %v165_v10 }
  0x32   :  { %211 = vst [vmem:[%s510_s3 + $0x68] sm:$0xff] %v195_v37  ;;  %v197_v19 = vmul.f32 1.050701, %v181_v39 }
  0x33   :  { %212 = vst [vmem:[%s510_s3 + $0x70] sm:$0xff] %v196_v38 }
  0x34   :  { %213 = vst [vmem:[%s510_s3 + $0x78] sm:$0xff] %v197_v19 }

// kernel: residual_block.4
= control target key start
LH: loop header
LB: loop body
LE: loop exit
PB: predicated region body
PF: predicated region fallthrough
CT: control target
= control target key end

     0   :  { %s1609_s15 = smov 0   ;;  %s2468_s0 = inlined_call_operand.vmem [shape: f32[4,10,18,32], index: 0, kind: input, shape index: {}]   ;;  %s2469_s1 = inlined_call_operand.vmem [shape: f32[288,32], index: 1, kind: input, shape index: {}]   ;;  %s2470_s2 = inlined_call_operand.vmem [shape: f32[512,32], index: 2, kind: output, shape index: {0}]   ;;  %s2471_s3 = inlined_call_operand.vmem [shape: f32[4,1,32], index: 3, kind: output, shape index: {1}]   ;;  %s2472_s4 = inlined_call_operand.vmem [shape: f32[4,1,32], index: 4, kind: output, shape index: {2}]  }
   0x1 LB: > { %s1615_s16 = sadd.s32 4294967295, %s1579_s15   ;;  %p1263_p0 = scmp.ge.s32.totalorder %s1579_s15, 1  ;;  %s1579_s15 = sphi %s1609_s15, %s15_s15  }
   0x2   : > { %p167_p1 = scmp.lt.s32.totalorder %s1579_s15, 5 }
   0x4   : > { %p168_p2 = pnand %p1263_p0, %p167_p1 }
   0x6   : > { %171 = sbr.rel (%p168_p2) target bundleno = 421 (0x1a5), region = 28 }
   0xb   : > { %p199_p3 = scmp.lt.s32.totalorder %s1615_s16, 3  ;;  %vm270_vm0 = vcmask 1046528   ;;  %vm311_vm1 = vcmask 1045504   ;;  %s1581_s22 = smov 96   ;;  %vm682_vm2 = vcmask 261120   ;;  %vm699_vm3 = vcmask 523264  }
   0xc   : > { %s1582_s23 = smov 32   ;;  %s1583_s24 = smov 64   ;;  %vm716_vm4 = vcmask 785408   ;;  %vm1097_vm5 = vcmask 253952  }
   0xd   : > { %s1621_s17 = scalar_select %p199_p3, %s1615_s16, 3 }
   0xf   : > { %s1321_s18 = smul.u32 240, %s1621_s17  ;;  %s212_s19 = scalar_lea.vmem %s2471_s3, %s1621_s17 }
  0x10   : > { %s215_s26 = scalar_lea.vmem %s2472_s4, %s1621_s17 }
  0x11   : > { %s1627_s21 = scalar_lea.vmem %s2468_s0, %s1321_s18 }
  0x12   : > { %v1630_v0 = vld [vmem:[%s1627_s21 + $0x18] sm:$0xff]  ;;  %v1633_v1 = vld [vmem:[%s1627_s21 + $0x30] sm:$0xff]  ;;  %v1641_v5 = vld [vmem:[%s1627_s21 + $0x20] sm:$0xff] }
  0x13   : > { %v1636_v2 = vld [vmem:[%s1627_s21 + $0x38] sm:$0xff]  ;;  %v281_v3 = vrot.slane %v1633_v1, 1  ;;  %v317_v6 = vrot.slane %v1630_v0, 2  ;;  %v1645_v7 = vld [vmem:[%s1627_s21] sm:$0xff]  ;;  %v318_v8 = vrot.slane %v1641_v5, 2  ;;  %v1649_v9 = vld [vmem:[%s1627_s21 + $0x8] sm:$0xff] }
  0x14   : > { %2488 = vst [vmem:[#allocation2_spill] sm:$0xff] %v1636_v2  ;;  %v282_v4 = vrot.slane %v1636_v2, 1  ;;  %v271_v10 = vrot.slane %v1645_v7, 1  ;;  %v218_v11 = vld [vmem:[%s1627_s21 + $0x10] sm:$0x3]  ;;  %v272_v13 = vrot.slane %v1649_v9, 1 }
  0x15   : > { %v221_v14 = vld [vmem:[%s1627_s21 + $0x28] sm:$0x3]  ;;  %v274_v15 = vrot.slane %v218_v11, 1  ;;  %v319_v17 = vsel %vm311_vm1, %v317_v6, %v318_v8  ;;  %v312_v20 = vrot.slane %v1645_v7, 2  ;;  %v313_v21 = vrot.slane %v1649_v9, 2  ;;  %v1693_v41 = vld [vmem:[%s1627_s21 + $0x50] sm:$0xff] }
  0x16   : > { %v1654_v12 = vsel %vm270_vm0, %v281_v3, %v282_v4  ;;  %v320_v18 = vrot.slane %v221_v14, 2  ;;  %v273_v19 = vsel %vm270_vm0, %v271_v10, %v272_v13  ;;  %v315_v25 = vrot.slane %v218_v11, 2  ;;  %v224_v29 = vld [vmem:[%s1627_s21 + $0x40] sm:$0x3]  ;;  %v1683_v38 = vld [vmem:[%s1627_s21 + $0x48] sm:$0xff]  ;;  %2490 = vst [vmem:[#allocation4_spill] sm:$0xff] %v1693_v41 }
  0x17   : > { %v1343_v16 = vpack.i.bf16 %v1654_v12, %v1630_v0  ;;  %v1333_v22 = vpack.i.bf16 %v319_v17, %v273_v19  ;;  %v275_v23 = vsel %vm270_vm0, %v272_v13, %v274_v15  ;;  %v314_v26 = vsel %vm311_vm1, %v312_v20, %v313_v21  ;;  %2489 = vst [vmem:[#allocation3_spill] sm:$0xff] %v1683_v38  ;;  %v1709_v50 = vld [vmem:[%s1627_s21 + $0x90] sm:$0xff]  ;;  %v1712_v51 = vld [vmem:[%s1627_s21 + $0x98] sm:$0xff]  ;;  %v1761_v19 = vld [vmem:[%s1627_s21 + $0xa8] sm:$0xff] }
  0x18   : > { %v321_v24 = vsel %vm311_vm1, %v318_v8, %v320_v18  ;;  %v316_v28 = vsel %vm311_vm1, %v313_v21, %v315_v25  ;;  %v1338_v31 = vpack.i.bf16 %v1633_v1, %v314_v26  ;;  %v284_v32 = vrot.slane %v224_v29, 1  ;;  %v227_v55 = vld [vmem:[%s1627_s21 + $0x58] sm:$0x3] }
  0x19   : > { %1344 = vrot.lane.b32.xlu1 %v1343_v16, %s1581_s22  ;;  %1334 = vrot.lane.b32.xlu0 %v1333_v22, %s1582_s23  ;;  %v1348_v27 = vpack.i.bf16 %v321_v24, %v275_v23  ;;  %v1353_v30 = vpack.i.bf16 %v1636_v2, %v316_v28  ;;  %v276_v33 = vrot.slane %v1630_v0, 1  ;;  %v277_v34 = vrot.slane %v1641_v5, 1  ;;  %v1770_v22 = vld [vmem:[%s1627_s21 + $0x68] sm:$0xff] }
  0x1a   : > { %v322_v35 = vrot.slane %v1633_v1, 2  ;;  %v323_v36 = vrot.slane %v1636_v2, 2  ;;  %v1680_v37 = vsel %vm270_vm0, %v282_v4, %v284_v32  ;;  %v1368_v43 = vpack.i.bf16 %v1683_v38, %v319_v17  ;;  %v236_v4 = vld [vmem:[%s1627_s21 + $0xa0] sm:$0x3]  ;;  %2495 = vst [vmem:[#allocation9_spill] sm:$0xff] %v1770_v22 }
  0x1b   : > { %1354 = vrot.lane.b32.xlu2 %v1353_v30, %s1583_s24  ;;  %v1687_v39 = vsel %vm270_vm0, %v276_v33, %v277_v34  ;;  %v1358_v42 = vpack.i.bf16 %v1680_v37, %v1641_v5  ;;  %v286_v44 = vrot.slane %v1683_v38, 1  ;;  %v287_v45 = vrot.slane %v1693_v41, 1  ;;  %v1754_v17 = vld [vmem:[%s1627_s21 + $0x60] sm:$0xff]  ;;  %v1787_v30 = vld [vmem:[%s1627_s21 + $0xb0] sm:$0xff] }
  0x1c   : > { %v1690_v40 = vsel %vm311_vm1, %v322_v35, %v323_v36  ;;  %v279_v47 = vrot.slane %v221_v14, 1  ;;  %v325_v48 = vrot.slane %v224_v29, 2  ;;  %v1383_v56 = vpack.i.bf16 %v1693_v41, %v321_v24  ;;  %2493 = vst [vmem:[#allocation7_spill] sm:$0xff] %v1754_v17  ;;  %v230_v33 = vld [vmem:[%s1627_s21 + $0x70] sm:$0x3] }
  0x1d   : > { %v1363_v46 = vpack.i.bf16 %v1690_v40, %v1687_v39  ;;  %v1705_v49 = vsel %vm270_vm0, %v286_v44, %v287_v45  ;;  %v289_v57 = vrot.slane %v227_v55, 1  ;;  %v342_v58 = vrot.slane %v1709_v50, 2 }
  0x1e   : > { %v1715_v52 = vsel %vm270_vm0, %v277_v34, %v279_v47  ;;  %v1718_v53 = vsel %vm311_vm1, %v323_v36, %v325_v48  ;;  %v1373_v54 = vpack.i.bf16 %v1705_v49, %v1633_v1  ;;  %v343_v59 = vrot.slane %v1712_v51, 2  ;;  %v239_v48 = vld [vmem:[%s1627_s21 + $0xb8] sm:$0x3] }
  0x1f   : > { %v1378_v60 = vpack.i.bf16 %v1718_v53, %v1715_v52  ;;  %v301_v61 = vrot.slane %v1709_v50, 1  ;;  %v302_v62 = vrot.slane %v1712_v51, 1  ;;  %v1733_v63 = vsel %vm270_vm0, %v287_v45, %v289_v57 }
  0x20   : > { %2491 = vst [vmem:[#allocation5_spill] sm:$0xff] %v1733_v63  ;;  %v1736_v3 = vsel %vm311_vm1, %v342_v58, %v343_v59  ;;  %v1388_v8 = vpack.i.bf16 %v1733_v63, %v1636_v2  ;;  %v345_v11 = vrot.slane %v236_v4, 2  ;;  %v304_v14 = vrot.slane %v236_v4, 1  ;;  %v1830_v4 = vld [vmem:[%s1627_s21 + $0x78] sm:$0xff] }
  0x21   : > { %1349 = vrot.lane.b32.xlu1 %v1348_v27, %s1582_s23  ;;  %1339 = vrot.lane.b32.xlu0 %v1338_v31, %s1583_s24  ;;  %v1741_v6 = vsel %vm270_vm0, %v301_v61, %v302_v62  ;;  %v1398_v10 = vpack.i.bf16 %v1690_v40, %v1736_v3  ;;  %v327_v15 = vrot.slane %v1683_v38, 2  ;;  %v328_v16 = vrot.slane %v1693_v41, 2  ;;  %2498 = vst [vmem:[#allocation12_spill] sm:$0xff] %v1830_v4 }
  0x22   : > { %2492 = vst [vmem:[#allocation6_spill] sm:$0xff] %v1741_v6  ;;  %v1393_v13 = vpack.i.bf16 %v1654_v12, %v1741_v6  ;;  %v1757_v18 = vsel %vm311_vm1, %v343_v59, %v345_v11  ;;  %v1764_v20 = vsel %vm270_vm0, %v302_v62, %v304_v14  ;;  %v1403_v23 = vpack.i.bf16 %v1683_v38, %v1761_v19  ;;  %v1827_v62 = vld [vmem:[%s1627_s21 + $0xc0] sm:$0xff]  ;;  %v1842_v11 = vld [vmem:[%s2469_s1 + $0xf8] sm:$0xff]  ;;  %v2010_v38 = vld [vmem:[%s2469_s1 + $0xb0] sm:$0xff] }
  0x23   : > { %1359 = vrot.lane.b32.xlu2 %v1358_v42, %s1581_s22  ;;  %2494 = vst [vmem:[#allocation8_spill] sm:$0xff] %v1764_v20  ;;  %v1767_v21 = vsel %vm311_vm1, %v327_v15, %v328_v16  ;;  %v1413_v24 = vpack.i.bf16 %v1757_v18, %v1754_v17  ;;  %v291_v25 = vrot.slane %v1754_v17, 1  ;;  %v292_v26 = vrot.slane %v1770_v22, 1  ;;  %v1851_v15 = vld [vmem:[%s1627_s21 + $0x80] sm:$0xff]  ;;  %914 = vmatpush.msra.mxu1 %v1842_v11 }
  0x24   : > { %v1408_v27 = vpack.i.bf16 %v1764_v20, %v1767_v21  ;;  %v330_v28 = vrot.slane %v227_v55, 2  ;;  %v1428_v34 = vpack.i.bf16 %v1770_v22, %v1718_v53  ;;  %v294_v35 = vrot.slane %v230_v33, 1 }
  0x25   : > { %v1783_v29 = vsel %vm270_vm0, %v291_v25, %v292_v26  ;;  %v347_v36 = vrot.slane %v1761_v19, 2  ;;  %v348_v42 = vrot.slane %v1787_v30, 2  ;;  %v306_v44 = vrot.slane %v1761_v19, 1 }
  0x26   : > { %2496 = vst [vmem:[#allocation10_spill] sm:$0xff] %v1783_v29  ;;  %v1790_v31 = vsel %vm311_vm1, %v328_v16, %v330_v28  ;;  %v1418_v32 = vpack.i.bf16 %v1787_v30, %v1783_v29  ;;  %v307_v45 = vrot.slane %v1787_v30, 1  ;;  %v350_v57 = vrot.slane %v239_v48, 2  ;;  %v1865_v28 = vld [vmem:[%s1627_s21 + $0xc8] sm:$0xff] }
  0x27   : > { %v1809_v47 = vsel %vm311_vm1, %v347_v36, %v348_v42  ;;  %v309_v59 = vrot.slane %v239_v48, 1  ;;  %v333_v61 = vrot.slane %v1770_v22, 2  ;;  %v1448_v16 = vpack.i.bf16 %v1754_v17, %v1827_v62  ;;  %v1885_v36 = vld [vmem:[%s2469_s1 + $0x118] sm:$0xff]  ;;  %v1904_v48 = vld [vmem:[%s2469_s1 + $0x110] sm:$0xff] }
  0x28   : > { %v297_v25 = vrot.slane %v1851_v15, 1  ;;  %991 = vmatpush.msra.mxu2 %v1885_v36 }
  0x29   : > { %1369 = vrot.lane.b32.xlu1 %v1368_v43, %s1583_s24  ;;  %1364 = vrot.lane.b32.xlu0 %v1363_v46, %s1582_s23  ;;  %v1423_v43 = vpack.i.bf16 %v1790_v31, %v1680_v37  ;;  %v1806_v46 = vsel %vm270_vm0, %v292_v26, %v294_v35  ;;  %v795_v35 = vld [vmem:[%s2469_s1 + $0x70] sm:$0xff] }
  0x2a   : > { %2497 = vst [vmem:[#allocation11_spill] sm:$0xff] %v1806_v46  ;;  %v1433_v55 = vpack.i.bf16 %v1806_v46, %v1693_v41  ;;  %992 = vmatpush.msra.mxu2 %v1904_v48  ;;  %v338_v41 = vrot.slane %v1851_v15, 2 }
  0x2b   : > { %1374 = vrot.lane.b32.xlu2 %v1373_v54, %s1581_s22  ;;  %v1814_v54 = vsel %vm270_vm0, %v306_v44, %v307_v45  ;;  %v794_v44 = vld [vmem:[%s2469_s1 + $0x68] sm:$0xff] }
  0x2c   : > { %v1438_v58 = vpack.i.bf16 %v1705_v49, %v1814_v54 }
  0x31   : > { %1384 = vrot.lane.b32.xlu1 %v1383_v56, %s1583_s24  ;;  %1379 = vrot.lane.b32.xlu0 %v1378_v60, %s1582_s23  ;;  %v1443_v56 = vpack.i.bf16 %v1767_v21, %v1809_v47  ;;  %v332_v60 = vrot.slane %v1754_v17, 2  ;;  %v337_v17 = vrot.slane %v1830_v4, 2 }
  0x33   : > { %1389 = vrot.lane.b32.xlu2 %v1388_v8, %s1581_s22  ;;  %v1833_v8 = vsel %vm311_vm1, %v348_v42, %v350_v57  ;;  %v1848_v14 = vsel %vm311_vm1, %v332_v60, %v333_v61  ;;  %v793_v57 = vld [vmem:[%s2469_s1 + $0x60] sm:$0xff]  ;;  %v1925_v60 = vld [vmem:[%s2469_s1 + $0x108] sm:$0xff] }
  0x34   : > { %2499 = vst [vmem:[#allocation13_spill] sm:$0xff] %v1833_v8  ;;  %993 = vmatpush.msra.mxu2 %v1925_v60 }
  0x39   : > { %1399 = vrot.lane.b32.xlu1 %v1398_v10, %s1583_s24  ;;  %1394 = vrot.lane.b32.xlu0 %v1393_v13, %s1582_s23  ;;  %v796_v10 = vld [vmem:[%s2469_s1 + $0x78] sm:$0xff]  ;;  %v1845_v13 = vsel %vm270_vm0, %v307_v45, %v309_v59  ;;  %v1899_v45 = vld [vmem:[%s2469_s1 + $0xe8] sm:$0xff] }
  0x3a   : > { %849 = vmatpush.msra.mxu0 %v796_v10  ;;  %1285 = vmatpush.msra.mxu3 %v796_v10  ;;  %v1453_v26 = vpack.i.bf16 %v1845_v13, %v1848_v14  ;;  %v1934_v10 = vld [vmem:[%s2469_s1 + $0xd8] sm:$0xff] }
  0x3b   : > { %1404 = vrot.lane.b32.xlu2 %v1403_v23, %s1581_s22  ;;  %v1458_v23 = vpack.i.bf16 %v1833_v8, %v1830_v4 }
  0x3c   : > { %850 = vmatpush.msra.mxu0 %v795_v35  ;;  %1286 = vmatpush.msra.mxu3 %v795_v35  ;;  %v1966_v35 = vld [vmem:[%s2469_s1 + $0xc8] sm:$0xff] }
  0x3e   : > { %851 = vmatpush.msra.mxu0 %v794_v44  ;;  %1287 = vmatpush.msra.mxu3 %v794_v44  ;;  %v355_v44 = vrot.slane %v1827_v62, 1 }
  0x40   : > { %852 = vmatpush.msra.mxu0 %v793_v57  ;;  %1288 = vmatpush.msra.mxu3 %v793_v57  ;;  %v1995_v57 = vld [vmem:[%s2469_s1 + $0xb8] sm:$0xff] }
  0x41   : > { %1414 = vrot.lane.b32.xlu1 %v1413_v24, %s1583_s24  ;;  %1409 = vrot.lane.b32.xlu0 %v1408_v27, %s1582_s23  ;;  %v296_v24 = vrot.slane %v1830_v4, 1  ;;  %v335_v27 = vrot.slane %v230_v33, 2  ;;  %v1880_v33 = vld [vmem:[%s2469_s1 + $0xf0] sm:$0xff] }
  0x42   : > { %915 = vmatpush.msra.mxu1 %v1880_v33 }
  0x43   : > { %1419 = vrot.lane.b32.xlu2 %v1418_v32, %s1581_s22  ;;  %v1868_v32 = vsel %vm270_vm0, %v296_v24, %v297_v25  ;;  %v1888_v42 = vsel %vm311_vm1, %v333_v61, %v335_v27  ;;  %v792_v61 = vld [vmem:[%s2469_s1 + $0x58] sm:$0xff]  ;;  %v791_v24 = vld [vmem:[%s2469_s1 + $0x50] sm:$0xff]  ;;  %v790_v27 = vld [vmem:[%s2469_s1 + $0x48] sm:$0xff] }
  0x44   : > { %916 = vmatpush.msra.mxu1 %v1899_v45  ;;  %v1468_v59 = vpack.i.bf16 %v1888_v42, %v1733_v63  ;;  %853 = vmatpush.msra.mxu0 %v792_v61 }
  0x45   : > { %1289 = vmatpush.msra.mxu3 %v792_v61  ;;  %v2018_v61 = vld [vmem:[%s1627_s21 + $0xd0] sm:$0x3] }
  0x46   : > { %854 = vmatpush.msra.mxu0 %v791_v24  ;;  %v358_v63 = vrot.slane %v2018_v61, 1 }
  0x47   : > { %1290 = vmatpush.msra.mxu3 %v791_v24  ;;  %v785_v24 = vld [vmem:[%s2469_s1 + $0x20] sm:$0xff] }
  0x48   : > { %855 = vmatpush.msra.mxu0 %v790_v27 }
  0x49   : > { %1429 = vrot.lane.b32.xlu1 %v1428_v34, %s1583_s24  ;;  %1424 = vrot.lane.b32.xlu0 %v1423_v43, %s1582_s23  ;;  %v1871_v34 = vld [vmem:[%s1627_s21 + $0x88] sm:$0x3]  ;;  %v1463_v43 = vpack.i.bf16 %v1865_v28, %v1868_v32 }
  0x4a   : > { %1291 = vmatpush.msra.mxu3 %v790_v27  ;;  %v340_v2 = vrot.slane %v1871_v34, 2 }
  0x4b   : > { %1434 = vrot.lane.b32.xlu2 %v1433_v55, %s1581_s22  ;;  %v1473_v55 = vpack.i.bf16 %v1851_v15, %v1790_v31 }
  0x51   : > { %1444 = vrot.lane.b32.xlu1 %v1443_v56, %s1583_s24  ;;  %1439 = vrot.lane.b32.xlu0 %v1438_v58, %s1582_s23  ;;  %v299_v56 = vrot.slane %v1871_v34, 1  ;;  %v1917_v58 = vld [vmem:[%s2469_s1 + $0xe0] sm:$0xff]  ;;  %v783_v34 = vld [vmem:[%s2469_s1 + $0x10] sm:$0xff] }
  0x52   : > { %917 = vmatpush.msra.mxu1 %v1917_v58 }
  0x53   : > { %1449 = vrot.lane.b32.xlu2 %v1448_v16, %s1581_s22  ;;  %v1938_v16 = vsel %vm270_vm0, %v297_v25, %v299_v56  ;;  %v1955_v25 = vld [vmem:[%s2469_s1 + $0xd0] sm:$0xff]  ;;  %v789_v56 = vld [vmem:[%s2469_s1 + $0x40] sm:$0xff] }
  0x54   : > { %918 = vmatpush.msra.mxu1 %v1934_v10  ;;  %856 = vmatpush.msra.mxu0 %v789_v56 }
  0x55   : > { %1292 = vmatpush.msra.mxu3 %v789_v56 }
  0x56   : > { %919 = vmatpush.msra.mxu1 %v1955_v25 }
  0x58   : > { %920 = vmatpush.msra.mxu1 %v1966_v35 }
  0x59   : > { %1459 = vrot.lane.b32.xlu1 %v1458_v23, %s1583_s24  ;;  %1454 = vrot.lane.b32.xlu0 %v1453_v26, %s1582_s23  ;;  %v1947_v23 = vld [vmem:[%s2469_s1 + $0x100] sm:$0xff]  ;;  %v1478_v26 = vpack.i.bf16 %v1938_v16, %v1770_v22  ;;  %v1483_v22 = vpack.i.bf16 %v1783_v29, %v1809_v47 }
  0x5a   : > { %2500 = vst [vmem:[#allocation14_spill] sm:$0xff] %v1947_v23  ;;  %994 = vmatpush.msra.mxu2 %v1947_v23  ;;  %v784_v23 = vld [vmem:[%s2469_s1 + $0x18] sm:$0xff] }
  0x5b   : > { %1464 = vrot.lane.b32.xlu2 %v1463_v43, %s1581_s22  ;;  %v1488_v43 = vpack.i.bf16 %v1848_v14, %v1827_v62  ;;  %1267 = vmatmul.msk.f32.vlgmr.msra.gmra.mxu2 %vm682_vm2, %v1690_v40  ;;  %v788_v40 = vld [vmem:[%s2469_s1 + $0x38] sm:$0xff] }
  0x5c   : > { %857 = vmatpush.msra.mxu0 %v788_v40  ;;  %1293 = vmatpush.msra.mxu3 %v788_v40  ;;  %v781_v40 = vld [vmem:[%s2469_s1] sm:$0xff] }
  0x61   : > { %1474 = vrot.lane.b32.xlu1 %v1473_v55, %s1583_s24  ;;  %1469 = vrot.lane.b32.xlu0 %v1468_v59, %s1582_s23  ;;  %v356_v55 = vrot.slane %v1865_v28, 1  ;;  %v1981_v59 = vld [vmem:[%s2469_s1 + $0xc0] sm:$0xff] }
  0x62   : > { %921 = vmatpush.msra.mxu1 %v1981_v59 }
  0x63   : > { %1479 = vrot.lane.b32.xlu2 %v1478_v26, %s1581_s22  ;;  %v1999_v29 = vsel %vm270_vm0, %v355_v44, %v356_v55  ;;  %v787_v26 = vld [vmem:[%s2469_s1 + $0x30] sm:$0xff]  ;;  %1268 = vmatmul.msk.f32.gmra.mxu2 %vm682_vm2, %v1718_v53  ;;  %v2043_v53 = vld [vmem:[%s2469_s1 + $0xa0] sm:$0xff]  ;;  %v2052_v27 = vsel %vm270_vm0, %v356_v55, %v358_v63  ;;  %v2070_v55 = vsel %vm311_vm1, %v338_v41, %v340_v2  ;;  %v782_v2 = vld [vmem:[%s2469_s1 + $0x8] sm:$0xff] }
  0x64   : > { %2501 = vst [vmem:[#allocation15_spill] sm:$0xff] %v1999_v29  ;;  %922 = vmatpush.msra.mxu1 %v1995_v57  ;;  %v1493_v44 = vpack.i.bf16 %v1830_v4, %v1999_v29  ;;  %858 = vmatpush.msra.mxu0 %v787_v26  ;;  %v2032_v29 = vld [vmem:[%s2469_s1 + $0xa8] sm:$0xff]  ;;  %v2067_v63 = vld [vmem:[%s2469_s1 + $0x90] sm:$0xff]  ;;  %v1508_v56 = vpack.i.bf16 %v2052_v27, %v1741_v6 }
  0x65   : > { %2502 = vst [vmem:[#allocation16_spill] sm:$0xff] %v2052_v27  ;;  %1294 = vmatpush.msra.mxu3 %v787_v26  ;;  %v2096_v26 = vld [vmem:[%s2469_s1 + $0x80] sm:$0xff] }
  0x66   : > { %923 = vmatpush.msra.mxu1 %v2010_v38 }
  0x68   : > { %924 = vmatpush.msra.mxu1 %v2032_v29 }
  0x69   : > { %1489 = vrot.lane.b32.xlu1 %v1488_v43, %s1583_s24  ;;  %1484 = vrot.lane.b32.xlu0 %v1483_v22, %s1582_s23  ;;  %v2013_v43 = vsel %vm311_vm1, %v337_v17, %v338_v41  ;;  %v1503_v22 = vpack.i.bf16 %v1865_v28, %v1709_v50  ;;  %v786_v17 = vld [vmem:[%s2469_s1 + $0x28] sm:$0xff] }
  0x6a   : > { %v1498_v4 = vpack.i.bf16 %v1833_v8, %v2013_v43  ;;  %859 = vmatpush.msra.mxu0 %v786_v17  ;;  %v2057_v8 = vld [vmem:[%s2469_s1 + $0x98] sm:$0xff]  ;;  %925 = vmatpush.msra.mxu1 %v2043_v53  ;;  %v2086_v41 = vld [vmem:[%s2469_s1 + $0x88] sm:$0xff] }
  0x6b   : > { %1494 = vrot.lane.b32.xlu2 %v1493_v44, %s1581_s22  ;;  %1269 = vmatmul.msk.f32.gmra.mxu2 %vm682_vm2, %v1767_v21  ;;  %v1513_v21 = vpack.i.bf16 %v2070_v55, %v1806_v46  ;;  %v376_v44 = vrot.slane %v1827_v62, 2 }
  0x6c   : > { %860 = vmatpush.msra.mxu0 %v785_v24  ;;  %926 = vmatpush.msra.mxu1 %v2057_v8 }
  0x6d   : > { %1295 = vmatpush.msra.mxu3 %v786_v17  ;;  %v2104_v17 = vld [vmem:[%s1627_s21 + $0xd8] sm:$0xff] }
  0x6e   : > { %861 = vmatpush.msra.mxu0 %v784_v23  ;;  %927 = vmatpush.msra.mxu1 %v2067_v63  ;;  %v1533_v6 = vpack.i.bf16 %v2013_v43, %v2104_v17 }
  0x6f   : > { %1296 = vmatpush.msra.mxu3 %v785_v24 }
  0x70   : > { %862 = vmatpush.msra.mxu0 %v783_v34  ;;  %928 = vmatpush.msra.mxu1 %v2086_v41 }
  0x71   : > { %1504 = vrot.lane.b32.xlu1 %v1503_v22, %s1583_s24  ;;  %1499 = vrot.lane.b32.xlu0 %v1498_v4, %s1582_s23  ;;  %v1518_v4 = vpack.i.bf16 %v1712_v51, %v1888_v42  ;;  %v377_v22 = vrot.slane %v1865_v28, 2  ;;  %v2114_v28 = vld [vmem:[%s1627_s21 + $0xe0] sm:$0xff] }
  0x72   : > { %863 = vmatpush.msra.mxu0 %v782_v2  ;;  %929 = vmatpush.msra.mxu1 %v2096_v26  ;;  %v385_v46 = vrot.slane %v2114_v28, 1 }
  0x73   : > { %1509 = vrot.lane.b32.xlu2 %v1508_v56, %s1581_s22  ;;  %v2111_v62 = vsel %vm311_vm1, %v376_v44, %v377_v22  ;;  %v1523_v56 = vpack.i.bf16 %v1764_v20, %v1851_v15  ;;  %1297 = vmatpush.msra.mxu3 %v784_v23  ;;  %v2133_v20 = vld [vmem:[%s1627_s21 + $0xe8] sm:$0x3]  ;;  %s1265_s21 = sshll.u32 %s1615_s16, 4 }
  0x74   : > { %864 = vmatpush.msra.mxu0 %v781_v40  ;;  %1270 = vmatmul.msk.f32.gmra.mxu2 %vm682_vm2, %v1790_v31  ;;  %v1528_v24 = vpack.i.bf16 %v1868_v32, %v2111_v62  ;;  %p205_p4 = scmp.lt.s32.totalorder %s1265_s21, 63 }
  0x75   : > { %v2106_v27 = vpop.permute.xlu2 %1354  ;;  %1298 = vmatpush.msra.mxu3 %v783_v34  ;;  %v1548_v34 = vpack.i.bf16 %v2114_v28, %v1761_v19 }
  0x76   : > { %s2519_s21 = smov (!%p205_p4, %s1265_s21), 63 }
  0x77   : > { %1299 = vmatpush.msra.mxu3 %v782_v2 }
  0x79   : > { %1519 = vrot.lane.b32.xlu1 %v1518_v4, %s1583_s24  ;;  %1514 = vrot.lane.b32.xlu0 %v1513_v21, %s1582_s23  ;;  %v384_v4 = vrot.slane %v2104_v17, 1  ;;  %v379_v21 = vrot.slane %v2018_v61, 2 }
  0x7a   : > { %1300 = vmatpush.msra.mxu3 %v781_v40 }
  0x7b   : > { %1524 = vrot.lane.b32.xlu2 %v1523_v56, %s1581_s22  ;;  %v386_v23 = vsel %vm270_vm0, %v384_v4, %v385_v46  ;;  %v2138_v31 = vsel %vm311_vm1, %v377_v22, %v379_v21 }
  0x7c   : > { %1301 = vmatpush.msrb.mxu3 %v1842_v11  ;;  %v1538_v61 = vpack.i.bf16 %v1709_v50, %v386_v23  ;;  %1271 = vmatmul.msk.f32.gmra.mxu2 %vm682_vm2, %v1848_v14  ;;  %v1543_v2 = vpack.i.bf16 %v2138_v31, %v1736_v3 }
  0x7d   : > { %v2130_v44 = vpop.permute.xlu2 %1359 }
  0x7e   : > { %1302 = vmatpush.msrb.mxu3 %v1880_v33 }
  0x80   : > { %1303 = vmatpush.msrb.mxu3 %v1899_v45  ;;  %v1563_v45 = vpack.i.bf16 %v1787_v30, %v2070_v55 }
  0x81   : > { %1534 = vrot.lane.b32.xlu1 %v1533_v6, %s1583_s24  ;;  %1529 = vrot.lane.b32.xlu0 %v1528_v24, %s1582_s23  ;;  %v387_v6 = vrot.slane %v2133_v20, 1 }
  0x82   : > { %1304 = vmatpush.msrb.mxu3 %v1917_v58 }
  0x83   : > { %1539 = vrot.lane.b32.xlu2 %v1538_v61, %s1581_s22  ;;  %v388_v11 = vsel %vm270_vm0, %v385_v46, %v387_v6  ;;  %v1558_v46 = vpack.i.bf16 %v1757_v18, %v1938_v16 }
  0x84   : > { %1305 = vmatpush.msrb.mxu3 %v1934_v10  ;;  %v1553_v33 = vpack.i.bf16 %v388_v11, %v1814_v54  ;;  %1272 = vmatmul.msk.f32.gmra.mxu2 %vm682_vm2, %v1888_v42 }
  0x85   : > { %v2154_v40 = vpop.permute.xlu2 %1374 }
  0x86   : > { %1306 = vmatpush.msrb.mxu3 %v1955_v25  ;;  %v1568_v25 = vpack.i.bf16 %v1845_v13, %v1712_v51 }
  0x88   : > { %1307 = vmatpush.msrb.mxu3 %v1966_v35 }
  0x89   : > { %1549 = vrot.lane.b32.xlu1 %v1548_v34, %s1583_s24  ;;  %1544 = vrot.lane.b32.xlu0 %v1543_v2, %s1582_s23 }
  0x8a   : > { %1308 = vmatpush.msrb.mxu3 %v1981_v59 }
  0x8b   : > { %v1345_v14 = vpop.permute.xlu1 %1344  ;;  %v1335_v22 = vpop.permute.xlu0 %1334  ;;  %1554 = vrot.lane.b32.xlu2 %v1553_v33, %s1581_s22  ;;  %v1356_v33 = vunpack.i.l.bf16 %v2106_v27 }
  0x8c   : > { %v1337_v10 = vunpack.i.h.bf16 %v1335_v22  ;;  %v1336_v56 = vunpack.i.l.bf16 %v1335_v22  ;;  %1309 = vmatpush.msrb.mxu3 %v1995_v57  ;;  %1273 = vmatmul.msk.f32.gmra.mxu2 %vm682_vm2, %v2013_v43  ;;  %v1347_v35 = vunpack.i.h.bf16 %v1345_v14  ;;  %v1346_v59 = vunpack.i.l.bf16 %v1345_v14 }
  0x8d   : > { %v2170_v58 = vpop.permute.xlu2 %1389  ;;  %v1357_v14 = vunpack.i.h.bf16 %v2106_v27  ;;  %v1362_v22 = vunpack.i.h.bf16 %v2130_v44 }
  0x8e   : > { %1310 = vmatpush.msrb.mxu3 %v2010_v38  ;;  %v683_v57 = vsel %vm682_vm2, %v1645_v7, %v1336_v56  ;;  %v733_v34 = vsel %vm682_vm2, %v1687_v39, %v1337_v10 }
  0x90   : > { %1311 = vmatpush.msrb.mxu3 %v2032_v29 }
  0x91   : > { %1564 = vrot.lane.b32.xlu1 %v1563_v45, %s1583_s24  ;;  %1559 = vrot.lane.b32.xlu0 %v1558_v46, %s1582_s23 }
  0x92   : > { %1312 = vmatpush.msrb.mxu3 %v2043_v53  ;;  %v1361_v53 = vunpack.i.l.bf16 %v2130_v44 }
  0x93   : > { %v1350_v42 = vpop.permute.xlu1 %1349  ;;  %v1340_v4 = vpop.permute.xlu0 %1339  ;;  %1569 = vrot.lane.b32.xlu2 %v1568_v25, %s1581_s22  ;;  %s1266_s22 = sshll.u32 %s2519_s21, 3 }
  0x94   : > { %v1342_v24 = vunpack.i.h.bf16 %v1340_v4  ;;  %v1341_v21 = vunpack.i.l.bf16 %v1340_v4  ;;  %v1352_v23 = vunpack.i.h.bf16 %v1350_v42  ;;  %v1351_v61 = vunpack.i.l.bf16 %v1350_v42  ;;  %1313 = vmatpush.msrb.mxu3 %v2057_v8  ;;  %1274 = vmatmul.msk.f32.gmra.mxu2 %vm682_vm2, %v2070_v55  ;;  %s2371_s14 = scalar_lea.vmem %s2470_s2, %s1266_s22 }
  0x95   : > { %v2190_v7 = vpop.permute.xlu2 %1404  ;;  %v1376_v4 = vunpack.i.l.bf16 %v2154_v40 }
  0x96   : > { %v700_v6 = vsel %vm699_vm3, %v683_v57, %v1341_v21  ;;  %v749_v43 = vsel %vm699_vm3, %v733_v34, %v1342_v24  ;;  %v684_v39 = vsel %vm682_vm2, %v1649_v9, %v1351_v61  ;;  %v734_v29 = vsel %vm682_vm2, %v1715_v52, %v1352_v23  ;;  %1314 = vmatpush.msrb.mxu3 %v2067_v63 }
  0x97   : > { %v717_v38 = vsel %vm716_vm4, %v700_v6, %v1346_v59  ;;  %v765_v2 = vsel %vm716_vm4, %v749_v43, %v1347_v35  ;;  %v701_v9 = vsel %vm699_vm3, %v684_v39, %v1356_v33  ;;  %v750_v52 = vsel %vm699_vm3, %v734_v29, %v1357_v14 }
  0x98   : > { %865 = vmatmul.f32.vlgmr.msra.gmra.mxu0 %v717_v38  ;;  %930 = vmatmul.f32.vlgmr.msra.gmra.mxu1 %v765_v2  ;;  %v718_v27 = vsel %vm716_vm4, %v701_v9, %v1361_v53  ;;  %v766_v10 = vsel %vm716_vm4, %v750_v52, %v1362_v22  ;;  %v1392_v6 = vunpack.i.h.bf16 %v2170_v58  ;;  %v1391_v43 = vunpack.i.l.bf16 %v2170_v58 }
  0x99   : > { %1315 = vmatpush.msrb.mxu3 %v2086_v41  ;;  %v1377_v41 = vunpack.i.h.bf16 %v2154_v40  ;;  %v1406_v39 = vunpack.i.l.bf16 %v2190_v7 }
  0x9b   : > { %v1370_v11 = vpop.permute.xlu1 %1369  ;;  %v1365_v45 = vpop.permute.xlu0 %1364  ;;  %1316 = vmatpush.msrb.mxu3 %v2096_v26 }
  0x9c   : > { %v1367_v46 = vunpack.i.h.bf16 %v1365_v45  ;;  %v1366_v8 = vunpack.i.l.bf16 %v1365_v45  ;;  %v1372_v44 = vunpack.i.h.bf16 %v1370_v11  ;;  %v1371_v56 = vunpack.i.l.bf16 %v1370_v11  ;;  %1275 = vmatmul.msk.f32.gmra.mxu2 %vm682_vm2, %v1736_v3 }
  0x9d   : > { %v2210_v55 = vpop.permute.xlu2 %1419 }
  0x9e   : > { %v685_v42 = vsel %vm682_vm2, %v1630_v0, %v1366_v8  ;;  %v735_v25 = vsel %vm682_vm2, %v1654_v12, %v1367_v46 }
  0x9f   : > { %v702_v26 = vsel %vm699_vm3, %v685_v42, %v1371_v56  ;;  %v751_v59 = vsel %vm699_vm3, %v735_v25, %v1372_v44 }
  0xa0   : > { %868 = vmatmul.f32.gmra.mxu0 %v718_v27  ;;  %933 = vmatmul.f32.gmra.mxu1 %v766_v10  ;;  %v719_v23 = vsel %vm716_vm4, %v702_v26, %v1376_v4  ;;  %v767_v0 = vsel %vm716_vm4, %v751_v59, %v1377_v41  ;;  %v1422_v10 = vunpack.i.h.bf16 %v2210_v55  ;;  %v2504_v26 = vld [vmem:[#allocation13_spill] sm:$0xff] }
  0xa3   : > { %v1385_v63 = vpop.permute.xlu1 %1384  ;;  %v1380_v35 = vpop.permute.xlu0 %1379 }
  0xa4   : > { %v1382_v24 = vunpack.i.h.bf16 %v1380_v35  ;;  %v1381_v21 = vunpack.i.l.bf16 %v1380_v35  ;;  %v1387_v61 = vunpack.i.h.bf16 %v1385_v63  ;;  %v1386_v12 = vunpack.i.l.bf16 %v1385_v63  ;;  %1276 = vmatmul.msk.f32.gmra.mxu2 %vm682_vm2, %v1757_v18 }
  0xa5   : > { %v2224_v57 = vpop.permute.xlu2 %1434  ;;  %v1421_v63 = vunpack.i.l.bf16 %v2210_v55 }
  0xa6   : > { %v686_v3 = vsel %vm682_vm2, %v1641_v5, %v1381_v21  ;;  %v736_v34 = vsel %vm682_vm2, %v1680_v37, %v1382_v24  ;;  %v1437_v21 = vunpack.i.h.bf16 %v2224_v57 }
  0xa7   : > { %v703_v29 = vsel %vm699_vm3, %v686_v3, %v1386_v12  ;;  %v752_v14 = vsel %vm699_vm3, %v736_v34, %v1387_v61  ;;  %v2506_v12 = vld [vmem:[#allocation5_spill] sm:$0xff] }
  0xa8   : > { %871 = vmatmul.f32.gmra.mxu0 %v719_v23  ;;  %936 = vmatmul.f32.gmra.mxu1 %v767_v0  ;;  %v720_v33 = vsel %vm716_vm4, %v703_v29, %v1391_v43  ;;  %v768_v58 = vsel %vm716_vm4, %v752_v14, %v1392_v6  ;;  %v1436_v23 = vunpack.i.l.bf16 %v2224_v57  ;;  %v2505_v0 = vld [vmem:[#allocation2_spill] sm:$0xff] }
  0xab   : > { %v1400_v40 = vpop.permute.xlu1 %1399  ;;  %v1395_v38 = vpop.permute.xlu0 %1394 }
  0xac   : > { %v1401_v2 = vunpack.i.l.bf16 %v1400_v40  ;;  %v1396_v11 = vunpack.i.l.bf16 %v1395_v38  ;;  %v1397_v5 = vunpack.i.h.bf16 %v1395_v38  ;;  %v1402_v53 = vunpack.i.h.bf16 %v1400_v40  ;;  %1277 = vmatmul.msk.f32.gmra.mxu2 %vm682_vm2, %v1809_v47 }
  0xad   : > { %v1450_v52 = vpop.permute.xlu2 %1449 }
  0xae   : > { %v695_v37 = vsel %vm682_vm2, %v1709_v50, %v1396_v11  ;;  %v687_v9 = vsel %vm682_vm2, %v1633_v1, %v1397_v5  ;;  %v1407_v50 = vunpack.i.h.bf16 %v2190_v7  ;;  %v1452_v14 = vunpack.i.h.bf16 %v1450_v52 }
  0xaf   : > { %v712_v22 = vsel %vm699_vm3, %v695_v37, %v1401_v2  ;;  %v704_v42 = vsel %vm699_vm3, %v687_v9, %v1402_v53  ;;  %v1451_v5 = vunpack.i.l.bf16 %v1450_v52 }
  0xb0   : > { %874 = vmatmul.f32.gmra.mxu0 %v720_v33  ;;  %939 = vmatmul.f32.gmra.mxu1 %v768_v58  ;;  %v729_v18 = vsel %vm716_vm4, %v712_v22, %v1406_v39  ;;  %v721_v7 = vsel %vm716_vm4, %v704_v42, %v1407_v50  ;;  %v2507_v33 = vld [vmem:[#allocation3_spill] sm:$0xff] }
  0xb1   : > { %901 = vmatmul.f32.vlgmr.msra.gmra.mxu3 %v729_v18 }
  0xb2   : > { %1317 = vmatpush.msra.mxu3 %v1885_v36 }
  0xb3   : > { %v1415_v45 = vpop.permute.xlu1 %1414  ;;  %v1410_v46 = vpop.permute.xlu0 %1409 }
  0xb4   : > { %v1417_v8 = vunpack.i.h.bf16 %v1415_v45  ;;  %v1416_v27 = vunpack.i.l.bf16 %v1415_v45  ;;  %v1412_v44 = vunpack.i.h.bf16 %v1410_v46  ;;  %v1411_v56 = vunpack.i.l.bf16 %v1410_v46  ;;  %1318 = vmatpush.msra.mxu3 %v1904_v48  ;;  %v2503_v48 = vld [vmem:[#allocation14_spill] sm:$0xff]  ;;  %1278 = vmatmul.msk.f32.gmra.mxu2 %vm682_vm2, %v2504_v26 }
  0xb6   : > { %v696_v1 = vsel %vm682_vm2, %v1712_v51, %v1412_v44  ;;  %v737_v36 = vsel %vm682_vm2, %v1705_v49, %v1411_v56  ;;  %1319 = vmatpush.msra.mxu3 %v1925_v60  ;;  %v1465_v60 = vpop.permute.xlu2 %1464  ;;  %v2508_v56 = vld [vmem:[#allocation10_spill] sm:$0xff] }
  0xb7   : > { %v713_v47 = vsel %vm699_vm3, %v696_v1, %v1417_v8  ;;  %v753_v25 = vsel %vm699_vm3, %v737_v36, %v1416_v27 }
  0xb8   : > { %877 = vmatmul.f32.gmra.mxu0 %v721_v7  ;;  %v730_v55 = vsel %vm716_vm4, %v713_v47, %v1422_v10  ;;  %v769_v41 = vsel %vm716_vm4, %v753_v25, %v1421_v63  ;;  %1320 = vmatpush.msra.mxu3 %v2503_v48  ;;  %v1466_v10 = vunpack.i.l.bf16 %v1465_v60 }
  0xb9   : > { %904 = vmatmul.f32.gmra.mxu3 %v730_v55  ;;  %942 = vmatmul.f32.gmra.mxu1 %v769_v41 }
  0xbb   : > { %v1430_v51 = vpop.permute.xlu1 %1429  ;;  %v1425_v4 = vpop.permute.xlu0 %1424 }
  0xbc   : > { %v1432_v49 = vunpack.i.h.bf16 %v1430_v51  ;;  %v1431_v35 = vunpack.i.l.bf16 %v1430_v51  ;;  %v1427_v59 = vunpack.i.h.bf16 %v1425_v4  ;;  %v1426_v24 = vunpack.i.l.bf16 %v1425_v4  ;;  %1279 = vmatmul.msk.f32.gmra.mxu2 %vm682_vm2, %v2111_v62 }
  0xbe   : > { %v688_v61 = vsel %vm682_vm2, %v2505_v0, %v1426_v24  ;;  %v738_v40 = vsel %vm682_vm2, %v2506_v12, %v1427_v59  ;;  %v1480_v37 = vpop.permute.xlu2 %1479  ;;  %v389_v0 = vrot.slane %v2104_v17, 2  ;;  %v2511_v17 = vld [vmem:[#allocation7_spill] sm:$0xff] }
  0xbf   : > { %v705_v3 = vsel %vm699_vm3, %v688_v61, %v1431_v35  ;;  %v754_v34 = vsel %vm699_vm3, %v738_v40, %v1432_v49  ;;  %v1482_v51 = vunpack.i.h.bf16 %v1480_v37  ;;  %v1481_v4 = vunpack.i.l.bf16 %v1480_v37  ;;  %v2509_v49 = vld [vmem:[#allocation4_spill] sm:$0xff] }
  0xc0   : > { %v722_v6 = vsel %vm716_vm4, %v705_v3, %v1436_v23  ;;  %v770_v43 = vsel %vm716_vm4, %v754_v34, %v1437_v21  ;;  %v390_v61 = vrot.slane %v2114_v28, 2 }
  0xc1   : > { %880 = vmatmul.f32.gmra.mxu0 %v722_v6  ;;  %945 = vmatmul.f32.gmra.mxu1 %v770_v43 }
  0xc2   : > { %v391_v3 = vsel %vm311_vm1, %v389_v0, %v390_v61 }
  0xc3   : > { %v1445_v38 = vpop.permute.xlu1 %1444  ;;  %v1440_v2 = vpop.permute.xlu0 %1439 }
  0xc4   : > { %v1447_v11 = vunpack.i.h.bf16 %v1445_v38  ;;  %v1446_v57 = vunpack.i.l.bf16 %v1445_v38  ;;  %v1442_v39 = vunpack.i.h.bf16 %v1440_v2  ;;  %v1441_v29 = vunpack.i.l.bf16 %v1440_v2  ;;  %1280 = vmatmul.msk.f32.gmra.mxu2 %vm682_vm2, %v2138_v31 }
  0xc6   : > { %v689_v58 = vsel %vm682_vm2, %v2507_v33, %v1442_v39  ;;  %v697_v22 = vsel %vm682_vm2, %v1761_v19, %v1441_v29  ;;  %v1467_v19 = vunpack.i.h.bf16 %v1465_v60  ;;  %v1495_v36 = vpop.permute.xlu2 %1494  ;;  %v2510_v60 = vld [vmem:[#allocation11_spill] sm:$0xff] }
  0xc7   : > { %v706_v53 = vsel %vm699_vm3, %v689_v58, %v1447_v11  ;;  %v714_v18 = vsel %vm699_vm3, %v697_v22, %v1446_v57  ;;  %v1497_v11 = vunpack.i.h.bf16 %v1495_v36  ;;  %v1496_v57 = vunpack.i.l.bf16 %v1495_v36 }
  0xc8   : > { %v723_v45 = vsel %vm716_vm4, %v706_v53, %v1452_v14  ;;  %v731_v9 = vsel %vm716_vm4, %v714_v18, %v1451_v5 }
  0xc9   : > { %883 = vmatmul.f32.gmra.mxu0 %v723_v45  ;;  %907 = vmatmul.f32.gmra.mxu3 %v731_v9 }
  0xcb   : > { %v1460_v62 = vpop.permute.xlu1 %1459  ;;  %v1455_v50 = vpop.permute.xlu0 %1454 }
  0xcc   : > { %v1462_v52 = vunpack.i.h.bf16 %v1460_v62  ;;  %v1461_v46 = vunpack.i.l.bf16 %v1460_v62  ;;  %v1457_v8 = vunpack.i.h.bf16 %v1455_v50  ;;  %v1456_v27 = vunpack.i.l.bf16 %v1455_v50  ;;  %1281 = vmatmul.msk.f32.gmra.mxu2 %vm682_vm2, %v391_v3 }
  0xce   : > { %v698_v44 = vsel %vm682_vm2, %v1787_v30, %v1457_v8  ;;  %v739_v63 = vsel %vm682_vm2, %v2508_v56, %v1456_v27  ;;  %v1510_v40 = vpop.permute.xlu2 %1509 }
  0xcf   : > { %v715_v42 = vsel %vm699_vm3, %v698_v44, %v1462_v52  ;;  %v755_v1 = vsel %vm699_vm3, %v739_v63, %v1461_v46  ;;  %v1512_v50 = vunpack.i.h.bf16 %v1510_v40  ;;  %v1511_v52 = vunpack.i.l.bf16 %v1510_v40 }
  0xd0   : > { %v732_v7 = vsel %vm716_vm4, %v715_v42, %v1467_v19  ;;  %v771_v47 = vsel %vm716_vm4, %v755_v1, %v1466_v10 }
  0xd1   : > { %910 = vmatmul.f32.gmra.mxu3 %v732_v7  ;;  %948 = vmatmul.f32.gmra.mxu1 %v771_v47 }
  0xd3   : > { %v1475_v31 = vpop.permute.xlu1 %1474  ;;  %v1470_v25 = vpop.permute.xlu0 %1469 }
  0xd4   : > { %v1477_v55 = vunpack.i.h.bf16 %v1475_v31  ;;  %v1476_v41 = vunpack.i.l.bf16 %v1475_v31  ;;  %v1472_v48 = vunpack.i.h.bf16 %v1470_v25  ;;  %v1471_v30 = vunpack.i.l.bf16 %v1470_v25  ;;  %v2512_v31 = vld [vmem:[#allocation9_spill] sm:$0xff] }
  0xd6   : > { %v690_v35 = vsel %vm682_vm2, %v2509_v49, %v1471_v30  ;;  %v740_v26 = vsel %vm682_vm2, %v2510_v60, %v1472_v48  ;;  %v1525_v45 = vpop.permute.xlu2 %1524 }
  0xd7   : > { %v707_v59 = vsel %vm699_vm3, %v690_v35, %v1476_v41  ;;  %v756_v24 = vsel %vm699_vm3, %v740_v26, %v1477_v55  ;;  %v1527_v7 = vunpack.i.h.bf16 %v1525_v45 }
  0xd8   : > { %v724_v21 = vsel %vm716_vm4, %v707_v59, %v1481_v4  ;;  %v772_v23 = vsel %vm716_vm4, %v756_v24, %v1482_v51 }
  0xd9   : > { %886 = vmatmul.f32.gmra.mxu0 %v724_v21  ;;  %951 = vmatmul.f32.gmra.mxu1 %v772_v23  ;;  %v2513_v23 = vld [vmem:[#allocation12_spill] sm:$0xff] }
  0xdb   : > { %v1490_v12 = vpop.permute.xlu1 %1489  ;;  %v1485_v34 = vpop.permute.xlu0 %1484 }
  0xdc   : > { %v1492_v6 = vunpack.i.h.bf16 %v1490_v12  ;;  %v1491_v43 = vunpack.i.l.bf16 %v1490_v12  ;;  %v1487_v38 = vunpack.i.h.bf16 %v1485_v34  ;;  %v1486_v2 = vunpack.i.l.bf16 %v1485_v34  ;;  %v2514_v12 = vld [vmem:[#allocation15_spill] sm:$0xff] }
  0xde   : > { %v691_v39 = vsel %vm682_vm2, %v2511_v17, %v1487_v38  ;;  %v745_v29 = vsel %vm682_vm2, %v1814_v54, %v1486_v2  ;;  %v2326_v44 = vpop.f32.mrf.mxu2  ;;  %v1540_v47 = vpop.permute.xlu2 %1539 }
  0xdf   : > { %v708_v14 = vsel %vm699_vm3, %v691_v39, %v1492_v6  ;;  %v761_v5 = vsel %vm699_vm3, %v745_v29, %v1491_v43  ;;  %v1542_v21 = vunpack.i.h.bf16 %v1540_v47 }
  0xe0   : > { %v725_v37 = vsel %vm716_vm4, %v708_v14, %v1497_v11  ;;  %v777_v33 = vsel %vm716_vm4, %v761_v5, %v1496_v57 }
  0xe1   : > { %889 = vmatmul.f32.gmra.mxu0 %v725_v37  ;;  %966 = vmatmul.f32.vlgmr.msrb.gmra.mxu3 %v777_v33  ;;  %v2515_v33 = vld [vmem:[#allocation6_spill] sm:$0xff] }
  0xe3   : > { %v1505_v58 = vpop.permute.xlu1 %1504  ;;  %v1500_v22 = vpop.permute.xlu0 %1499 }
  0xe4   : > { %v1507_v53 = vunpack.i.h.bf16 %v1505_v58  ;;  %v1506_v18 = vunpack.i.l.bf16 %v1505_v58  ;;  %v1502_v9 = vunpack.i.h.bf16 %v1500_v22  ;;  %v1501_v62 = vunpack.i.l.bf16 %v1500_v22  ;;  %v2516_v22 = vld [vmem:[#allocation16_spill] sm:$0xff] }
  0xe6   : > { %v741_v54 = vsel %vm682_vm2, %v1868_v32, %v1501_v62  ;;  %v746_v46 = vsel %vm682_vm2, %v1845_v13, %v1502_v9  ;;  %v1526_v13 = vunpack.i.l.bf16 %v1525_v45  ;;  %v2336_v49 = vpop.f32.mrf.mxu2  ;;  %v1555_v6 = vpop.permute.xlu2 %1554 }
  0xe7   : > { %v757_v8 = vsel %vm699_vm3, %v741_v54, %v1506_v18  ;;  %v762_v27 = vsel %vm699_vm3, %v746_v46, %v1507_v53  ;;  %v1557_v14 = vunpack.i.h.bf16 %v1555_v6  ;;  %v1556_v5 = vunpack.i.l.bf16 %v1555_v6 }
  0xe8   : > { %v773_v19 = vsel %vm716_vm4, %v757_v8, %v1511_v52  ;;  %v778_v10 = vsel %vm716_vm4, %v762_v27, %v1512_v50  ;;  %v392_v27 = vrot.slane %v2133_v20, 2 }
  0xe9   : > { %954 = vmatmul.f32.gmra.mxu1 %v773_v19  ;;  %969 = vmatmul.f32.gmra.mxu3 %v778_v10 }
  0xeb   : > { %v1520_v56 = vpop.permute.xlu1 %1519  ;;  %v1515_v63 = vpop.permute.xlu0 %1514 }
  0xec   : > { %v1522_v42 = vunpack.i.h.bf16 %v1520_v56  ;;  %v1521_v1 = vunpack.i.l.bf16 %v1520_v56  ;;  %v1517_v32 = vunpack.i.h.bf16 %v1515_v63  ;;  %v1516_v36 = vunpack.i.l.bf16 %v1515_v63 }
  0xee   : > { %v692_v25 = vsel %vm682_vm2, %v2512_v31, %v1516_v36  ;;  %v742_v55 = vsel %vm682_vm2, %v1938_v16, %v1517_v32  ;;  %v1541_v16 = vunpack.i.l.bf16 %v1540_v47  ;;  %v1002_v37 = vpop.f32.mrf.mxu2  ;;  %v1570_v52 = vpop.permute.xlu2 %1569  ;;  %v393_v47 = vsel %vm311_vm1, %v390_v61, %v392_v27 }
  0xef   : > { %v709_v41 = vsel %vm699_vm3, %v692_v25, %v1521_v1  ;;  %v758_v48 = vsel %vm699_vm3, %v742_v55, %v1522_v42  ;;  %v1572_v56 = vunpack.i.h.bf16 %v1570_v52  ;;  %v1571_v63 = vunpack.i.l.bf16 %v1570_v52  ;;  %v2517_v1 = vld [vmem:[#allocation8_spill] sm:$0xff] }
  0xf0   : > { %v726_v30 = vsel %vm716_vm4, %v709_v41, %v1526_v13  ;;  %v774_v51 = vsel %vm716_vm4, %v758_v48, %v1527_v7 }
  0xf1   : > { %892 = vmatmul.f32.gmra.mxu0 %v726_v30  ;;  %957 = vmatmul.f32.gmra.mxu1 %v774_v51 }
  0xf3   : > { %v1535_v4 = vpop.permute.xlu1 %1534  ;;  %v1530_v35 = vpop.permute.xlu0 %1529 }
  0xf4   : > { %v1537_v60 = vunpack.i.h.bf16 %v1535_v4  ;;  %v1536_v26 = vunpack.i.l.bf16 %v1535_v4  ;;  %v1532_v59 = vunpack.i.h.bf16 %v1530_v35  ;;  %v1531_v24 = vunpack.i.l.bf16 %v1530_v35 }
  0xf6   : > { %v693_v0 = vsel %vm682_vm2, %v2513_v23, %v1532_v59  ;;  %v747_v40 = vsel %vm682_vm2, %v2514_v12, %v1531_v24 }
  0xf7   : > { %v710_v3 = vsel %vm699_vm3, %v693_v0, %v1537_v60  ;;  %v763_v34 = vsel %vm699_vm3, %v747_v40, %v1536_v26  ;;  %v1005_v36 = vpop.f32.mrf.mxu2 }
  0xf8   : > { %v727_v43 = vsel %vm716_vm4, %v710_v3, %v1542_v21  ;;  %v779_v38 = vsel %vm716_vm4, %v763_v34, %v1541_v16 }
  0xf9   : > { %895 = vmatmul.f32.gmra.mxu0 %v727_v43  ;;  %972 = vmatmul.f32.gmra.mxu3 %v779_v38 }
  0xfb   : > { %v1550_v2 = vpop.permute.xlu1 %1549  ;;  %v1545_v11 = vpop.permute.xlu0 %1544 }
  0xfc   : > { %v1552_v57 = vunpack.i.h.bf16 %v1550_v2  ;;  %v1551_v17 = vunpack.i.l.bf16 %v1550_v2  ;;  %v1547_v39 = vunpack.i.h.bf16 %v1545_v11  ;;  %v1546_v29 = vunpack.i.l.bf16 %v1545_v11 }
  0xfe   : > { %v743_v58 = vsel %vm682_vm2, %v2515_v33, %v1546_v29  ;;  %v748_v53 = vsel %vm682_vm2, %v2516_v22, %v1547_v39 }
  0xff   : > { %v759_v18 = vsel %vm699_vm3, %v743_v58, %v1551_v17  ;;  %v764_v45 = vsel %vm699_vm3, %v748_v53, %v1552_v57 }
 0x100   : > { %v775_v9 = vsel %vm716_vm4, %v759_v18, %v1556_v5  ;;  %v780_v62 = vsel %vm716_vm4, %v764_v45, %v1557_v14 }
 0x101   : > { %960 = vmatmul.f32.gmra.mxu1 %v775_v9  ;;  %975 = vmatmul.f32.gmra.mxu3 %v780_v62 }
 0x103   : > { %v1565_v50 = vpop.permute.xlu1 %1564  ;;  %v1560_v54 = vpop.permute.xlu0 %1559 }
 0x104   : > { %v1567_v46 = vunpack.i.h.bf16 %v1565_v50  ;;  %v1566_v8 = vunpack.i.l.bf16 %v1565_v50  ;;  %v1562_v19 = vunpack.i.h.bf16 %v1560_v54  ;;  %v1561_v10 = vunpack.i.l.bf16 %v1560_v54 }
 0x106   : > { %v694_v42 = vsel %vm682_vm2, %v1851_v15, %v1561_v10  ;;  %v744_v32 = vsel %vm682_vm2, %v2517_v1, %v1562_v19  ;;  %v1008_v15 = vpop.f32.mrf.mxu2 }
 0x107   : > { %v711_v7 = vsel %vm699_vm3, %v694_v42, %v1566_v8  ;;  %v760_v13 = vsel %vm699_vm3, %v744_v32, %v1567_v46 }
 0x108   : > { %v728_v20 = vsel %vm716_vm4, %v711_v7, %v1571_v63  ;;  %v776_v31 = vsel %vm716_vm4, %v760_v13, %v1572_v56 }
 0x109   : > { %898 = vmatmul.f32.gmra.mxu0 %v728_v20  ;;  %963 = vmatmul.f32.gmra.mxu1 %v776_v31 }
 0x10a   : > { %1282 = vmatmul.msk.f32.vlgmr.msra.gmra.mxu3 %vm682_vm2, %v393_v47 }
 0x10e   : > { %v1011_v61 = vpop.f32.mrf.mxu2 }
 0x115   : > { %v866_v25 = vpop.f32.mrf.mxu0  ;;  %v931_v55 = vpop.f32.mrf.mxu1 }
 0x116   : > { %v932_v41 = vadd.f32 %v931_v55, %v866_v25  ;;  %v1014_v16 = vpop.f32.mrf.mxu2 }
 0x118   : > { %v997_v28 = vadd.f32 %v2326_v44, %v932_v41 }
 0x11a   : > { %1044 = vst.msk [vmem:[%s2371_s14] sm:$0xff] %vm682_vm2, %v997_v28  ;;  %v1099_v4 = vmul.f32 %v997_v28, %v997_v28  ;;  %v1060_v60 = vsel %vm682_vm2, %v997_v28, 0.0 }
 0x11c   : > { %v1115_v44 = vsel %vm682_vm2, %v1099_v4, 0.0 }
 0x11d   : > { %v869_v48 = vpop.f32.mrf.mxu0  ;;  %v934_v30 = vpop.f32.mrf.mxu1 }
 0x11e   : > { %v935_v51 = vadd.f32 %v934_v30, %v869_v48  ;;  %v1017_v17 = vpop.f32.mrf.mxu2 }
 0x120   : > { %v1000_v35 = vadd.f32 %v2336_v49, %v935_v51 }
 0x122   : > { %1045 = vst.msk [vmem:[%s2371_s14 + $0x8] sm:$0xff] %vm682_vm2, %v1000_v35  ;;  %v1061_v26 = vsel %vm682_vm2, %v1000_v35, 0.0  ;;  %v1100_v59 = vmul.f32 %v1000_v35, %v1000_v35 }
 0x123   : > { %v1062_v24 = vadd.f32 %v1061_v26, %v1060_v60 }
 0x124   : > { %v1116_v21 = vsel %vm682_vm2, %v1100_v59, 0.0 }
 0x125   : > { %v1117_v23 = vadd.f32 %v1116_v21, %v1115_v44  ;;  %v872_v0 = vpop.f32.mrf.mxu0  ;;  %v937_v12 = vpop.f32.mrf.mxu1 }
 0x126   : > { %v938_v40 = vadd.f32 %v937_v12, %v872_v0  ;;  %v1020_v45 = vpop.f32.mrf.mxu2 }
 0x128   : > { %v1003_v3 = vadd.f32 %v1002_v37, %v938_v40 }
 0x12a   : > { %1046 = vst.msk [vmem:[%s2371_s14 + $0x10] sm:$0xff] %vm682_vm2, %v1003_v3  ;;  %v1063_v49 = vsel %vm682_vm2, %v1003_v3, 0.0  ;;  %v1101_v34 = vmul.f32 %v1003_v3, %v1003_v3 }
 0x12b   : > { %v1064_v6 = vadd.f32 %v1063_v49, %v1062_v24 }
 0x12c   : > { %v1118_v43 = vsel %vm682_vm2, %v1101_v34, 0.0 }
 0x12d   : > { %v1119_v38 = vadd.f32 %v1118_v43, %v1117_v23  ;;  %v875_v2 = vpop.f32.mrf.mxu0  ;;  %v940_v11 = vpop.f32.mrf.mxu1 }
 0x12e   : > { %v941_v57 = vadd.f32 %v940_v11, %v875_v2  ;;  %v1023_v56 = vpop.f32.mrf.mxu2 }
 0x130   : > { %v1006_v39 = vadd.f32 %v1005_v36, %v941_v57 }
 0x132   : > { %1047 = vst.msk [vmem:[%s2371_s14 + $0x18] sm:$0xff] %vm682_vm2, %v1006_v39  ;;  %v1065_v29 = vsel %vm682_vm2, %v1006_v39, 0.0  ;;  %v1102_v14 = vmul.f32 %v1006_v39, %v1006_v39 }
 0x133   : > { %v1066_v5 = vadd.f32 %v1065_v29, %v1064_v6 }
 0x134   : > { %v1120_v37 = vsel %vm682_vm2, %v1102_v14, 0.0  ;;  %v902_v19 = vpop.f32.mrf.mxu3 }
 0x135   : > { %v1121_v33 = vadd.f32 %v1120_v37, %v1119_v38  ;;  %v878_v58 = vpop.f32.mrf.mxu0 }
 0x136   : > { %v943_v22 = vpop.f32.mrf.mxu1  ;;  %v1026_v42 = vpop.f32.mrf.mxu2 }
 0x137   : > { %v944_v53 = vadd.f32 %v943_v22, %v878_v58 }
 0x139   : > { %v1009_v18 = vadd.f32 %v1008_v15, %v944_v53 }
 0x13b   : > { %1048 = vst.msk [vmem:[%s2371_s14 + $0x20] sm:$0xff] %vm682_vm2, %v1009_v18  ;;  %v1067_v9 = vsel %vm682_vm2, %v1009_v18, 0.0  ;;  %v1103_v62 = vmul.f32 %v1009_v18, %v1009_v18 }
 0x13c   : > { %v1068_v50 = vadd.f32 %v1067_v9, %v1066_v5  ;;  %v905_v63 = vpop.f32.mrf.mxu3 }
 0x13d   : > { %v1122_v52 = vsel %vm682_vm2, %v1103_v62, 0.0 }
 0x13e   : > { %v1123_v54 = vadd.f32 %v1122_v52, %v1121_v33  ;;  %v881_v46 = vpop.f32.mrf.mxu0  ;;  %v946_v8 = vpop.f32.mrf.mxu1 }
 0x13f   : > { %v947_v27 = vadd.f32 %v946_v8, %v881_v46  ;;  %v2399_v15 = vpop.f32.mrf.mxu2 }
 0x141   : > { %v1012_v10 = vadd.f32 %v1011_v61, %v947_v27 }
 0x143   : > { %1049 = vst.msk [vmem:[%s2371_s14 + $0x28] sm:$0xff] %vm682_vm2, %v1012_v10  ;;  %v1104_v0 = vmul.f32 %v1012_v10, %v1012_v10  ;;  %v1069_v3 = vsel %vm682_vm2, %v1012_v10, 0.0 }
 0x144   : > { %v1070_v39 = vadd.f32 %v1069_v3, %v1068_v50 }
 0x145   : > { %v1124_v6 = vsel %vm682_vm2, %v1104_v0, 0.0 }
 0x146   : > { %v884_v1 = vpop.f32.mrf.mxu0  ;;  %v1125_v33 = vadd.f32 %v1124_v6, %v1123_v54 }
 0x147   : > { %v1032_v41 = vpop.f32.mrf.mxu2 }
 0x14c   : > { %v908_v13 = vpop.f32.mrf.mxu3 }
 0x14e   : > { %v949_v32 = vpop.f32.mrf.mxu1 }
 0x14f   : > { %v950_v36 = vadd.f32 %v949_v32, %v884_v1  ;;  %v1035_v26 = vpop.f32.mrf.mxu2 }
 0x151   : > { %v1015_v7 = vadd.f32 %v1014_v16, %v950_v36 }
 0x153   : > { %1050 = vst.msk [vmem:[%s2371_s14 + $0x30] sm:$0xff] %vm682_vm2, %v1015_v7  ;;  %v1105_v49 = vmul.f32 %v1015_v7, %v1015_v7  ;;  %v1071_v2 = vsel %vm682_vm2, %v1015_v7, 0.0 }
 0x154   : > { %v2403_v55 = vpop.f32.mrf.mxu3  ;;  %v1072_v58 = vadd.f32 %v1071_v2, %v1070_v39 }
 0x155   : > { %v1126_v29 = vsel %vm682_vm2, %v1105_v49, 0.0 }
 0x156   : > { %v887_v47 = vpop.f32.mrf.mxu0  ;;  %v952_v20 = vpop.f32.mrf.mxu1 }
 0x157   : > { %v953_v31 = vadd.f32 %v952_v20, %v887_v47  ;;  %v1038_v40 = vpop.f32.mrf.mxu2 }
 0x159   : > { %v1018_v25 = vadd.f32 %v1017_v17, %v953_v31 }
 0x15b   : > { %1051 = vst.msk [vmem:[%s2371_s14 + $0x38] sm:$0xff] %vm682_vm2, %v1018_v25  ;;  %v1106_v11 = vmul.f32 %v1018_v25, %v1018_v25  ;;  %v1073_v14 = vsel %vm682_vm2, %v1018_v25, 0.0 }
 0x15c   : > { %v1074_v9 = vadd.f32 %v1073_v14, %v1072_v58 }
 0x15d   : > { %v1128_v22 = vsel %vm682_vm2, %v1106_v11, 0.0 }
 0x15e   : > { %v890_v48 = vpop.f32.mrf.mxu0 }
 0x164   : > { %v967_v28 = vpop.f32.mrf.mxu3 }
 0x165   : > { %v968_v61 = vadd.f32 %v967_v28, %v902_v19 }
 0x166   : > { %v955_v30 = vpop.f32.mrf.mxu1 }
 0x167   : > { %v956_v51 = vadd.f32 %v955_v30, %v890_v48  ;;  %v2405_v4 = vadd.f32 %v1032_v41, %v968_v61 }
 0x169   : > { %v1021_v35 = vadd.f32 %v1020_v45, %v956_v51  ;;  %1056 = vst.msk [vmem:[%s2371_s14 + $0x60] sm:$0xff] %vm682_vm2, %v2405_v4  ;;  %v1127_v45 = vadd.f32 %v1126_v29, %v1125_v33  ;;  %v1111_v47 = vmul.f32 %v2405_v4, %v2405_v4  ;;  %v1083_v61 = vsel %vm682_vm2, %v2405_v4, 0.0 }
 0x16b   : > { %1052 = vst.msk [vmem:[%s2371_s14 + $0x40] sm:$0xff] %vm682_vm2, %v1021_v35  ;;  %v1107_v5 = vmul.f32 %v1021_v35, %v1021_v35  ;;  %v1075_v53 = vsel %vm682_vm2, %v1021_v35, 0.0  ;;  %v1129_v8 = vadd.f32 %v1128_v22, %v1127_v45 }
 0x16c   : > { %v970_v60 = vpop.f32.mrf.mxu3  ;;  %v1076_v27 = vadd.f32 %v1075_v53, %v1074_v9 }
 0x16d   : > { %v971_v59 = vadd.f32 %v970_v60, %v905_v63  ;;  %v1130_v50 = vsel %vm682_vm2, %v1107_v5, 0.0 }
 0x16e   : > { %v893_v24 = vpop.f32.mrf.mxu0  ;;  %v958_v44 = vpop.f32.mrf.mxu1 }
 0x16f   : > { %v959_v21 = vadd.f32 %v958_v44, %v893_v24  ;;  %v2412_v16 = vadd.f32 %v1035_v26, %v971_v59  ;;  %v1138_v26 = vsel %vm682_vm2, %v1111_v47, 0.0 }
 0x171   : > { %v1024_v23 = vadd.f32 %v1023_v56, %v959_v21  ;;  %1057 = vst.msk [vmem:[%s2371_s14 + $0x68] sm:$0xff] %vm682_vm2, %v2412_v16  ;;  %v1085_v59 = vsel %vm682_vm2, %v2412_v16, 0.0 }
 0x173   : > { %1053 = vst.msk [vmem:[%s2371_s14 + $0x48] sm:$0xff] %vm682_vm2, %v1024_v23  ;;  %v1108_v18 = vmul.f32 %v1024_v23, %v1024_v23  ;;  %v1077_v52 = vsel %vm682_vm2, %v1024_v23, 0.0 }
 0x174   : > { %v1078_v1 = vadd.f32 %v1077_v52, %v1076_v27 }
 0x175   : > { %v1132_v10 = vsel %vm682_vm2, %v1108_v18, 0.0 }
 0x176   : > { %v896_v43 = vpop.f32.mrf.mxu0 }
 0x17c   : > { %v973_v12 = vpop.f32.mrf.mxu3 }
 0x17d   : > { %v974_v34 = vadd.f32 %v973_v12, %v908_v13 }
 0x17e   : > { %v961_v38 = vpop.f32.mrf.mxu1 }
 0x17f   : > { %v962_v57 = vadd.f32 %v961_v38, %v896_v43  ;;  %v1039_v17 = vadd.f32 %v1038_v40, %v974_v34 }
 0x181   : > { %v1027_v37 = vadd.f32 %v1026_v42, %v962_v57  ;;  %1058 = vst.msk [vmem:[%s2371_s14 + $0x70] sm:$0xff] %vm682_vm2, %v1039_v17  ;;  %v1131_v42 = vadd.f32 %v1130_v50, %v1129_v8  ;;  %v1113_v24 = vmul.f32 %v1039_v17, %v1039_v17  ;;  %v1087_v21 = vsel %vm682_vm2, %v1039_v17, 0.0 }
 0x183   : > { %1054 = vst.msk [vmem:[%s2371_s14 + $0x50] sm:$0xff] %vm682_vm2, %v1027_v37  ;;  %v1109_v46 = vmul.f32 %v1027_v37, %v1027_v37  ;;  %v1079_v56 = vsel %vm682_vm2, %v1027_v37, 0.0  ;;  %v1133_v7 = vadd.f32 %v1132_v10, %v1131_v42  ;;  %v1142_v40 = vsel %vm682_vm2, %v1113_v24, 0.0 }
 0x184   : > { %v976_v62 = vpop.f32.mrf.mxu3  ;;  %v1080_v13 = vadd.f32 %v1079_v56, %v1078_v1 }
 0x185   : > { %v1134_v32 = vsel %vm682_vm2, %v1109_v46, 0.0  ;;  %v977_v41 = vadd.f32 %v976_v62, %v2403_v55 }
 0x186   : > { %v899_v54 = vpop.f32.mrf.mxu0  ;;  %v964_v19 = vpop.f32.mrf.mxu1  ;;  %v1135_v25 = vadd.f32 %v1134_v32, %v1133_v7 }
 0x187   : > { %v965_v63 = vadd.f32 %v964_v19, %v899_v54 }
 0x189   : > { %v1030_v36 = vadd.f32 %v2399_v15, %v965_v63  ;;  %v1112_v15 = vmul.f32 %v2412_v16, %v2412_v16 }
 0x18b   : > { %1055 = vst.msk [vmem:[%s2371_s14 + $0x58] sm:$0xff] %vm682_vm2, %v1030_v36  ;;  %v1081_v20 = vsel %vm682_vm2, %v1030_v36, 0.0  ;;  %v1110_v31 = vmul.f32 %v1030_v36, %v1030_v36  ;;  %v1140_v4 = vsel %vm682_vm2, %v1112_v15, 0.0 }
 0x18c   : > { %v1082_v28 = vadd.f32 %v1081_v20, %v1080_v13 }
 0x18d   : > { %v1136_v48 = vsel %vm682_vm2, %v1110_v31, 0.0  ;;  %v1041_v30 = vpop.f32.mrf.mxu3 }
 0x18e   : > { %v1084_v51 = vadd.f32 %v1083_v61, %v1082_v28  ;;  %v1137_v35 = vadd.f32 %v1136_v48, %v1135_v25  ;;  %v1042_v60 = vadd.f32 %v1041_v30, %v977_v41 }
 0x190   : > { %v1139_v55 = vadd.f32 %v1138_v26, %v1137_v35  ;;  %1059 = vst.msk [vmem:[%s2371_s14 + $0x78] sm:$0xff] %vm682_vm2, %v1042_v60  ;;  %v1086_v44 = vadd.f32 %v1085_v59, %v1084_v51  ;;  %v1114_v23 = vmul.f32 %v1042_v60, %v1042_v60  ;;  %v1089_v3 = vsel %vm682_vm2, %v1042_v60, 0.0 }
 0x192   : > { %v1088_v0 = vadd.f32 %v1087_v21, %v1086_v44  ;;  %v1141_v12 = vadd.f32 %v1140_v4, %v1139_v55  ;;  %v1144_v16 = vsel %vm682_vm2, %v1114_v23, 0.0 }
 0x194   : > { %v1090_v49 = vadd.f32 %v1089_v3, %v1088_v0  ;;  %v1143_v34 = vadd.f32 %v1142_v40, %v1141_v12 }
 0x196   : > { %v1091_v6 = vrot.slane %v1090_v49, 4  ;;  %v1145_v43 = vadd.f32 %v1144_v16, %v1143_v34 }
 0x198   : > { %v1092_v38 = vadd.f32 %v1091_v6, %v1090_v49  ;;  %v1146_v2 = vrot.slane %v1145_v43, 4 }
 0x19a   : > { %v1093_v11 = vrot.slane %v1092_v38, 2  ;;  %v1147_v57 = vadd.f32 %v1146_v2, %v1145_v43 }
 0x19c   : > { %v1094_v17 = vadd.f32 %v1093_v11, %v1092_v38  ;;  %v1148_v39 = vrot.slane %v1147_v57, 2 }
 0x19e   : > { %v1095_v29 = vrot.slane %v1094_v17, 1  ;;  %v1149_v14 = vadd.f32 %v1148_v39, %v1147_v57 }
 0x1a0   : > { %v1096_v5 = vadd.f32 %v1095_v29, %v1094_v17  ;;  %v1150_v37 = vrot.slane %v1149_v14, 1 }
 0x1a2   : > { %1098 = vst.msk [vmem:[%s212_s19] sm:$0x1] %vm1097_vm5, %v1096_v5  ;;  %v1151_v33 = vadd.f32 %v1150_v37, %v1149_v14 }
 0x1a4   : > { %1152 = vst.msk [vmem:[%s215_s26] sm:$0x1] %vm1097_vm5, %v1151_v33 }
 0x1a5 PF: > { %s15_s15 = sadd.s32 1, %s1579_s15  }
 0x1a6   : > { %p12_p5 = scmp.ge.s32.totalorder %s15_s15, 6  }
 0x1a8   :  { %14 = sbr.rel (!%p12_p5) target bundleno = 1 (0x1), region = 82 }

// kernel: residual_block.7
= control target key start
LH: loop header
LB: loop body
LE: loop exit
PB: predicated region body
PF: predicated region fallthrough
CT: control target
= control target key end

     0   :  { %s597_s0 = inlined_call_operand.vmem [shape: f32[128,128], index: 0, kind: input, shape index: {}]   ;;  %s598_s2 = inlined_call_operand.vmem [shape: f32[1,128], index: 2, kind: input, shape index: {}]   ;;  %s599_s3 = inlined_call_operand.vmem [shape: f32[1,128], index: 3, kind: input, shape index: {}]   ;;  %s600_s1 = inlined_call_operand.vmem [shape: f32[128,128], index: 1, kind: input, shape index: {}]   ;;  %s601_s4 = inlined_call_operand.vmem [shape: f32[128,128], index: 4, kind: output, shape index: {}]  }
   0x1   :  { %v17_v0 = vld [vmem:[%s597_s0] sm:$0xff]  ;;  %v18_v4 = vld [vmem:[%s597_s0 + $0x8] sm:$0xff]  ;;  %v19_v5 = vld [vmem:[%s597_s0 + $0x10] sm:$0xff] }
   0x2   :  { %v334_v1 = vld [vmem:[%s598_s2] ss:$0 sm:$0xff]  ;;  %v74_v8 = vld [vmem:[%s600_s1 + $0x8] sm:$0xff]  ;;  %v20_v10 = vld [vmem:[%s597_s0 + $0x18] sm:$0xff] }
   0x3   :  { %v339_v2 = vld [vmem:[%s599_s3] ss:$0 sm:$0xff]  ;;  %v37_v3 = vmul.f32 %v334_v1, %v17_v0  ;;  %v38_v7 = vmul.f32 %v334_v1, %v18_v4  ;;  %v39_v9 = vmul.f32 %v334_v1, %v19_v5  ;;  %v75_v12 = vld [vmem:[%s600_s1 + $0x10] sm:$0xff]  ;;  %v40_v13 = vmul.f32 %v334_v1, %v20_v10  ;;  %v22_v15 = vld [vmem:[%s597_s0 + $0x28] sm:$0xff] }
   0x4   :  { %v73_v6 = vld [vmem:[%s600_s1] sm:$0xff]  ;;  %v76_v18 = vld [vmem:[%s600_s1 + $0x18] sm:$0xff]  ;;  %v42_v20 = vmul.f32 %v334_v1, %v22_v15  ;;  %v23_v21 = vld [vmem:[%s597_s0 + $0x30] sm:$0xff] }
   0x5   :  { %v57_v11 = vadd.f32 %v339_v2, %v37_v3  ;;  %v21_v14 = vld [vmem:[%s597_s0 + $0x20] sm:$0xff]  ;;  %v58_v16 = vadd.f32 %v339_v2, %v38_v7  ;;  %v59_v17 = vadd.f32 %v339_v2, %v39_v9  ;;  %v60_v23 = vadd.f32 %v339_v2, %v40_v13  ;;  %v78_v32 = vld [vmem:[%s600_s1 + $0x28] sm:$0xff]  ;;  %v79_v34 = vld [vmem:[%s600_s1 + $0x30] sm:$0xff] }
   0x6   :  { %v41_v19 = vmul.f32 %v334_v1, %v21_v14  ;;  %v43_v24 = vmul.f32 %v334_v1, %v23_v21  ;;  %v77_v28 = vld [vmem:[%s600_s1 + $0x20] sm:$0xff]  ;;  %v62_v29 = vadd.f32 %v339_v2, %v42_v20  ;;  %v24_v44 = vld [vmem:[%s597_s0 + $0x38] sm:$0xff]  ;;  %v26_v48 = vld [vmem:[%s597_s0 + $0x48] sm:$0xff] }
   0x7   :  { %v380_v22 = vadd.f32 %v73_v6, %v57_v11  ;;  %v384_v25 = vadd.f32 %v74_v8, %v58_v16  ;;  %v386_v26 = vadd.f32 %v75_v12, %v59_v17  ;;  %v394_v31 = vadd.f32 %v76_v18, %v60_v23  ;;  %v25_v47 = vld [vmem:[%s597_s0 + $0x40] sm:$0xff]  ;;  %v27_v50 = vld [vmem:[%s597_s0 + $0x50] sm:$0xff]  ;;  %v28_v54 = vld [vmem:[%s597_s0 + $0x58] sm:$0xff] }
   0x8   :  { %v61_v27 = vadd.f32 %v339_v2, %v41_v19  ;;  %v63_v33 = vadd.f32 %v339_v2, %v43_v24  ;;  %v408_v42 = vadd.f32 %v78_v32, %v62_v29  ;;  %v44_v53 = vmul.f32 %v334_v1, %v24_v44  ;;  %v80_v56 = vld [vmem:[%s600_s1 + $0x38] sm:$0xff]  ;;  %v81_v61 = vld [vmem:[%s600_s1 + $0x40] sm:$0xff]  ;;  %v82_v3 = vld [vmem:[%s600_s1 + $0x48] sm:$0xff] }
   0x9   :  { %v121_v30 = vmin.f32 %v380_v22, 0.0  ;;  %v122_v35 = vmin.f32 %v384_v25, 0.0  ;;  %v123_v36 = vmin.f32 %v386_v26, 0.0  ;;  %v124_v38 = vmin.f32 %v394_v31, 0.0  ;;  %v29_v5 = vld [vmem:[%s597_s0 + $0x60] sm:$0xff]  ;;  %v83_v12 = vld [vmem:[%s600_s1 + $0x50] sm:$0xff] }
   0xa   :  { %v406_v39 = vadd.f32 %v77_v28, %v61_v27  ;;  %v410_v43 = vadd.f32 %v79_v34, %v63_v33  ;;  %vm105_vm0 = vcmp.gt.f32.partialorder %v380_v22, 0.0  ;;  %vm106_vm1 = vcmp.gt.f32.partialorder %v384_v25, 0.0 }
   0xb   :  { %v137_v37 = vmul.f32 1.442695, %v121_v30  ;;  %v139_v40 = vmul.f32 1.442695, %v122_v35  ;;  %v141_v41 = vmul.f32 1.442695, %v123_v36  ;;  %v45_v57 = vmul.f32 %v334_v1, %v25_v47 }
   0xc   :  { %v143_v45 = vmul.f32 1.442695, %v124_v38  ;;  %v125_v46 = vmin.f32 %v406_v39, 0.0  ;;  %v126_v49 = vmin.f32 %v408_v42, 0.0  ;;  %vm107_vm2 = vcmp.gt.f32.partialorder %v386_v26, 0.0 }
   0xd   :  { %271 = vpow2.f32 %v137_v37  ;;  %v127_v52 = vmin.f32 %v410_v43, 0.0  ;;  %vm108_vm3 = vcmp.gt.f32.partialorder %v394_v31, 0.0  ;;  %v46_v58 = vmul.f32 %v334_v1, %v26_v48 }
   0xe   :  { %273 = vpow2.f32 %v139_v40  ;;  %v145_v51 = vmul.f32 1.442695, %v125_v46  ;;  %v147_v55 = vmul.f32 1.442695, %v126_v49  ;;  %v64_v60 = vadd.f32 %v339_v2, %v44_v53 }
   0xf   :  { %275 = vpow2.f32 %v141_v41  ;;  %v149_v59 = vmul.f32 1.442695, %v127_v52  ;;  %v47_v62 = vmul.f32 %v334_v1, %v27_v50  ;;  %v65_v63 = vadd.f32 %v339_v2, %v45_v57 }
  0x10   :  { %277 = vpow2.f32 %v143_v45  ;;  %v66_v0 = vadd.f32 %v339_v2, %v46_v58  ;;  %v48_v4 = vmul.f32 %v334_v1, %v28_v54  ;;  %vm109_vm4 = vcmp.gt.f32.partialorder %v406_v39, 0.0 }
  0x11   :  { %279 = vpow2.f32 %v145_v51  ;;  %v455_v7 = vadd.f32 %v80_v56, %v64_v60  ;;  %v67_v8 = vadd.f32 %v339_v2, %v47_v62  ;;  %vm110_vm5 = vcmp.gt.f32.partialorder %v408_v42, 0.0  ;;  %v32_v60 = vld [vmem:[%s597_s0 + $0x78] sm:$0xff] }
  0x12   :  { %281 = vpow2.f32 %v147_v55  ;;  %vm111_vm6 = vcmp.gt.f32.partialorder %v410_v43, 0.0  ;;  %v460_v11 = vadd.f32 %v81_v61, %v65_v63  ;;  %v466_v16 = vadd.f32 %v82_v3, %v66_v0 }
  0x13   :  { %v272_v6 = vpop.eup %271  ;;  %283 = vpow2.f32 %v149_v59  ;;  %v128_v15 = vmin.f32 %v455_v7, 0.0  ;;  %v49_v17 = vmul.f32 %v334_v1, %v29_v5  ;;  %v68_v23 = vadd.f32 %v339_v2, %v48_v4  ;;  %v86_v4 = vld [vmem:[%s600_s1 + $0x68] sm:$0xff] }
  0x14   :  { %v274_v9 = vpop.eup %273  ;;  %v253_v10 = vadd.f32 -1.0, %v272_v6  ;;  %v129_v21 = vmin.f32 %v460_v11, 0.0  ;;  %v471_v30 = vadd.f32 %v83_v12, %v67_v8  ;;  %v130_v55 = vmin.f32 %v466_v16, 0.0 }
  0x15   :  { %v276_v13 = vpop.eup %275  ;;  %v254_v14 = vadd.f32 -1.0, %v274_v9  ;;  %v151_v29 = vmul.f32 1.442695, %v128_v15  ;;  %vm112_vm7 = vcmp.gt.f32.partialorder %v455_v7, 0.0  ;;  %v52_v12 = vmul.f32 %v334_v1, %v32_v60 }
  0x16   :  { %v278_v18 = vpop.eup %277  ;;  %v185_v19 = vmul.f32 1.6732632, %v253_v10  ;;  %v255_v20 = vadd.f32 -1.0, %v276_v13  ;;  %v153_v36 = vmul.f32 1.442695, %v129_v21  ;;  %v131_v58 = vmin.f32 %v471_v30, 0.0 }
  0x17   :  { %v280_v24 = vpop.eup %279  ;;  %v186_v27 = vmul.f32 1.6732632, %v254_v14  ;;  %v256_v28 = vadd.f32 -1.0, %v278_v18  ;;  %285 = vpow2.f32 %v151_v29  ;;  %v155_v62 = vmul.f32 1.442695, %v130_v55  ;;  %v87_v10 = vld [vmem:[%s600_s1 + $0x70] sm:$0xff] }
  0x18   :  { %v282_v32 = vpop.eup %281  ;;  %v201_v33 = vsel %vm105_vm0, %v380_v22, %v185_v19  ;;  %v187_v34 = vmul.f32 1.6732632, %v255_v20  ;;  %v257_v35 = vadd.f32 -1.0, %v280_v24  ;;  %287 = vpow2.f32 %v153_v36  ;;  %v88_v21 = vld [vmem:[%s600_s1 + $0x78] sm:$0xff] }
  0x19   :  { %v284_v37 = vpop.eup %283  ;;  %v217_v38 = vmul.f32 1.050701, %v201_v33  ;;  %v202_v40 = vsel %vm106_vm1, %v384_v25, %v186_v27  ;;  %v188_v41 = vmul.f32 1.6732632, %v256_v28  ;;  %v258_v44 = vadd.f32 -1.0, %v282_v32  ;;  %v84_v25 = vld [vmem:[%s600_s1 + $0x58] sm:$0xff] }
  0x1a   :  { %v218_v45 = vmul.f32 1.050701, %v202_v40  ;;  %v203_v46 = vsel %vm107_vm2, %v386_v26, %v187_v34  ;;  %v189_v47 = vmul.f32 1.6732632, %v257_v35  ;;  %v259_v48 = vadd.f32 -1.0, %v284_v37 }
  0x1b   :  { %233 = vst [vmem:[%s601_s4] sm:$0xff] %v217_v38  ;;  %v219_v22 = vmul.f32 1.050701, %v203_v46  ;;  %v204_v49 = vsel %vm108_vm3, %v394_v31, %v188_v41  ;;  %v190_v50 = vmul.f32 1.6732632, %v258_v44  ;;  %v30_v31 = vld [vmem:[%s597_s0 + $0x68] sm:$0xff]  ;;  %v517_v59 = vadd.f32 %v84_v25, %v68_v23 }
  0x1c   :  { %234 = vst [vmem:[%s601_s4 + $0x8] sm:$0xff] %v218_v45  ;;  %v220_v26 = vmul.f32 1.050701, %v204_v49  ;;  %v205_v51 = vsel %vm109_vm4, %v406_v39, %v189_v47  ;;  %v191_v52 = vmul.f32 1.6732632, %v259_v48  ;;  %v31_v39 = vld [vmem:[%s597_s0 + $0x70] sm:$0xff]  ;;  %v50_v63 = vmul.f32 %v334_v1, %v30_v31 }
  0x1d   :  { %235 = vst [vmem:[%s601_s4 + $0x10] sm:$0xff] %v219_v22  ;;  %v221_v53 = vmul.f32 1.050701, %v205_v51  ;;  %v206_v54 = vsel %vm110_vm5, %v408_v42, %v190_v50  ;;  %v85_v42 = vld [vmem:[%s600_s1 + $0x60] sm:$0xff]  ;;  %v157_v0 = vmul.f32 1.442695, %v131_v58  ;;  %v51_v5 = vmul.f32 %v334_v1, %v31_v39  ;;  %v286_v6 = vpop.eup %285 }
  0x1e   :  { %236 = vst [vmem:[%s601_s4 + $0x18] sm:$0xff] %v220_v26  ;;  %v222_v56 = vmul.f32 1.050701, %v206_v54  ;;  %v207_v57 = vsel %vm111_vm6, %v410_v43, %v191_v52  ;;  %v69_v43 = vadd.f32 %v339_v2, %v49_v17  ;;  %v132_v3 = vmin.f32 %v517_v59, 0.0  ;;  %v288_v13 = vpop.eup %287 }
  0x1f   :  { %237 = vst [vmem:[%s601_s4 + $0x20] sm:$0xff] %v221_v53  ;;  %v223_v61 = vmul.f32 1.050701, %v207_v57  ;;  %289 = vpow2.f32 %v155_v62  ;;  %v70_v9 = vadd.f32 %v339_v2, %v50_v63  ;;  %v260_v14 = vadd.f32 -1.0, %v286_v6 }
  0x20   :  { %238 = vst [vmem:[%s601_s4 + $0x28] sm:$0xff] %v222_v56  ;;  %v542_v8 = vadd.f32 %v85_v42, %v69_v43  ;;  %291 = vpow2.f32 %v157_v0  ;;  %v159_v15 = vmul.f32 1.442695, %v132_v3  ;;  %v71_v17 = vadd.f32 %v339_v2, %v51_v5 }
  0x21   :  { %239 = vst [vmem:[%s601_s4 + $0x30] sm:$0xff] %v223_v61  ;;  %vm113_vm8 = vcmp.gt.f32.partialorder %v460_v11, 0.0  ;;  %v261_v18 = vadd.f32 -1.0, %v288_v13  ;;  %v102_v20 = vadd.f32 %v86_v4, %v70_v9  ;;  %v192_v23 = vmul.f32 1.6732632, %v260_v14 }
  0x22   :  { %v133_v19 = vmin.f32 %v542_v8, 0.0  ;;  %293 = vpow2.f32 %v159_v15  ;;  %v103_v24 = vadd.f32 %v87_v10, %v71_v17  ;;  %v72_v1 = vadd.f32 %v339_v2, %v52_v12 }
  0x23   :  { %v193_v27 = vmul.f32 1.6732632, %v261_v18  ;;  %v134_v29 = vmin.f32 %v102_v20, 0.0  ;;  %v208_v32 = vsel %vm112_vm7, %v455_v7, %v192_v23  ;;  %vm114_vm9 = vcmp.gt.f32.partialorder %v466_v16, 0.0 }
  0x24   :  { %v161_v28 = vmul.f32 1.442695, %v133_v19  ;;  %v135_v33 = vmin.f32 %v103_v24, 0.0  ;;  %v104_v34 = vadd.f32 %v88_v21, %v72_v1  ;;  %v224_v36 = vmul.f32 1.050701, %v208_v32 }
  0x25   :  { %v290_v35 = vpop.eup %289  ;;  %v209_v37 = vsel %vm113_vm8, %v460_v11, %v193_v27  ;;  %v163_v38 = vmul.f32 1.442695, %v134_v29  ;;  %vm115_vm10 = vcmp.gt.f32.partialorder %v471_v30, 0.0  ;;  %vm116_vm11 = vcmp.gt.f32.partialorder %v517_v59, 0.0 }
  0x26   :  { %295 = vpow2.f32 %v161_v28  ;;  %v292_v40 = vpop.eup %291  ;;  %v225_v41 = vmul.f32 1.050701, %v209_v37  ;;  %v262_v2 = vadd.f32 -1.0, %v290_v35  ;;  %v165_v44 = vmul.f32 1.442695, %v135_v33  ;;  %240 = vst [vmem:[%s601_s4 + $0x38] sm:$0xff] %v224_v36 }
  0x27   :  { %v263_v7 = vadd.f32 -1.0, %v292_v40  ;;  %297 = vpow2.f32 %v163_v38  ;;  %v136_v45 = vmin.f32 %v104_v34, 0.0  ;;  %vm117_vm12 = vcmp.gt.f32.partialorder %v542_v8, 0.0 }
  0x28   :  { %v294_v46 = vpop.eup %293  ;;  %241 = vst [vmem:[%s601_s4 + $0x40] sm:$0xff] %v225_v41  ;;  %v194_v11 = vmul.f32 1.6732632, %v262_v2  ;;  %299 = vpow2.f32 %v165_v44  ;;  %vm118_vm13 = vcmp.gt.f32.partialorder %v102_v20, 0.0  ;;  %vm119_vm14 = vcmp.gt.f32.partialorder %v103_v24, 0.0 }
  0x29   :  { %v195_v47 = vmul.f32 1.6732632, %v263_v7  ;;  %v264_v48 = vadd.f32 -1.0, %v294_v46  ;;  %v167_v22 = vmul.f32 1.442695, %v136_v45  ;;  %vm120_vm15 = vcmp.gt.f32.partialorder %v104_v34, 0.0 }
  0x2a   :  { %v210_v49 = vsel %vm114_vm9, %v466_v16, %v194_v11 }
  0x2b   :  { %v226_v25 = vmul.f32 1.050701, %v210_v49  ;;  %v211_v26 = vsel %vm115_vm10, %v471_v30, %v195_v47  ;;  %v196_v51 = vmul.f32 1.6732632, %v264_v48  ;;  %301 = vpow2.f32 %v167_v22 }
  0x2c   :  { %v296_v50 = vpop.eup %295  ;;  %v227_v52 = vmul.f32 1.050701, %v211_v26 }
  0x2d   :  { %v265_v31 = vadd.f32 -1.0, %v296_v50  ;;  %v298_v53 = vpop.eup %297  ;;  %242 = vst [vmem:[%s601_s4 + $0x48] sm:$0xff] %v226_v25  ;;  %v212_v54 = vsel %vm116_vm11, %v517_v59, %v196_v51 }
  0x2e   :  { %v300_v16 = vpop.eup %299  ;;  %243 = vst [vmem:[%s601_s4 + $0x50] sm:$0xff] %v227_v52  ;;  %v228_v55 = vmul.f32 1.050701, %v212_v54  ;;  %v266_v39 = vadd.f32 -1.0, %v298_v53 }
  0x2f   :  { %v197_v30 = vmul.f32 1.6732632, %v265_v31  ;;  %v267_v56 = vadd.f32 -1.0, %v300_v16 }
  0x30   :  { %244 = vst [vmem:[%s601_s4 + $0x58] sm:$0xff] %v228_v55  ;;  %v198_v58 = vmul.f32 1.6732632, %v266_v39 }
  0x31   :  { %v213_v57 = vsel %vm117_vm12, %v542_v8, %v197_v30  ;;  %v302_v59 = vpop.eup %301  ;;  %v199_v60 = vmul.f32 1.6732632, %v267_v56 }
  0x32   :  { %v229_v42 = vmul.f32 1.050701, %v213_v57  ;;  %v214_v61 = vsel %vm118_vm13, %v102_v20, %v198_v58  ;;  %v268_v62 = vadd.f32 -1.0, %v302_v59 }
  0x33   :  { %v230_v43 = vmul.f32 1.050701, %v214_v61  ;;  %v215_v63 = vsel %vm119_vm14, %v103_v24, %v199_v60 }
  0x34   :  { %245 = vst [vmem:[%s601_s4 + $0x60] sm:$0xff] %v229_v42  ;;  %v231_v0 = vmul.f32 1.050701, %v215_v63  ;;  %v200_v3 = vmul.f32 1.6732632, %v268_v62 }
  0x35   :  { %246 = vst [vmem:[%s601_s4 + $0x68] sm:$0xff] %v230_v43 }
  0x36   :  { %247 = vst [vmem:[%s601_s4 + $0x70] sm:$0xff] %v231_v0  ;;  %v216_v4 = vsel %vm120_vm15, %v104_v34, %v200_v3 }
  0x37   :  { %v232_v5 = vmul.f32 1.050701, %v216_v4 }
  0x39   :  { %248 = vst [vmem:[%s601_s4 + $0x78] sm:$0xff] %v232_v5 }

</bundles_post_ra>
